<compile_context>
chip_gen: v5e
topology: v5e:2x2
jax: 0.10.0
libtpu: 0.0.40
codegen_flags: <defaults>
</compile_context>

<pallas_src>
import functools
import math

import jax
import jax.numpy as jnp
from jax.experimental import pallas as pl
from jax.experimental.pallas import tpu as pltpu


# ----------------------------------------------------------------------------
# Kernel 1: direct conv (stride 1) + folded-BN bias + optional ReLU.
#   x block : (1, Hp, Wp, ct)   bf16  (spatially padded input, one Cin tile)
#   w block : (KH*KW, ct, cot)  bf16  (BN scale already folded in)
#   b block : (1, cot)          f32
#   o block : (1, H, W, cot)    out_dtype
#   acc     : (H*W, cot)        f32 scratch, persists across the Cin grid axis
# ----------------------------------------------------------------------------
def _conv_bn_act_kernel(x_ref, w_ref, b_ref, o_ref, acc_ref, *,
                        kh, kw, oh, ow, act):
    k = pl.program_id(2)

    @pl.when(k == 0)
    def _():
        acc_ref[...] = jnp.zeros_like(acc_ref)

    x = x_ref[0]                                  # (Hp, Wp, ct)
    contrib = None
    for tap in range(kh * kw):                    # taps folded into the K loop
        ky, kx = divmod(tap, kw)
        xs = x[ky:ky + oh, kx:kx + ow, :].reshape(oh * ow, x.shape[-1])
        d = jnp.dot(xs, w_ref[tap], preferred_element_type=jnp.float32)
        contrib = d if contrib is None else contrib + d
    acc_ref[...] += contrib

    @pl.when(k == pl.num_programs(2) - 1)
    def _():
        y = acc_ref[...] + b_ref[...]
        if act:
            y = jnp.maximum(y, 0.0)
        o_ref[...] = y.reshape(1, oh, ow, y.shape[-1]).astype(o_ref.dtype)


# ----------------------------------------------------------------------------
# Kernel 2: direct 3x3 conv + bias + ReLU, then fused 1x1 conv + bias + ReLU
# in the finalize epilogue (the (H*W, Cmid) activation never touches HBM).
#   x block  : (1, Hp, Wp, ct)   bf16
#   w1 block : (KH*KW, ct, Cmid) bf16
#   b1 block : (1, Cmid)         f32
#   w2 block : (Cmid, Cout)      bf16
#   b2 block : (1, Cout)         f32
#   o block  : (1, H, W, Cout)   out_dtype
#   acc      : (H*W, Cmid)       f32 scratch, persists across the Cin grid axis
# ----------------------------------------------------------------------------
def _conv3x3_then_1x1_kernel(x_ref, w1_ref, b1_ref, w2_ref, b2_ref, o_ref,
                             acc_ref, *, kh, kw, oh, ow):
    k = pl.program_id(1)

    @pl.when(k == 0)
    def _():
        acc_ref[...] = jnp.zeros_like(acc_ref)

    x = x_ref[0]                                  # (Hp, Wp, ct)
    contrib = None
    for tap in range(kh * kw):
        ky, kx = divmod(tap, kw)
        xs = x[ky:ky + oh, kx:kx + ow, :].reshape(oh * ow, x.shape[-1])
        d = jnp.dot(xs, w1_ref[tap], preferred_element_type=jnp.float32)
        contrib = d if contrib is None else contrib + d
    acc_ref[...] += contrib

    @pl.when(k == pl.num_programs(1) - 1)
    def _():
        y = jnp.maximum(acc_ref[...] + b1_ref[...], 0.0)          # 3x3 epilogue
        y = y.astype(jnp.bfloat16)
        z = jnp.dot(y, w2_ref[...], preferred_element_type=jnp.float32)
        z = jnp.maximum(z + b2_ref[...], 0.0)                     # 1x1 epilogue
        o_ref[...] = z.reshape(1, oh, ow, z.shape[-1]).astype(o_ref.dtype)


def _pick_tile(c, pref):
    """Channel tile: multiple of 128 that divides c, else the full extent."""
    if c % 128 == 0:
        t = min(pref, c)
        while c % t:
            t -= 128
        return t
    return c


def _pad_spatial(x_nhwc, ph, pw):
    xb = x_nhwc.astype(jnp.bfloat16)
    if ph or pw:
        xb = jnp.pad(xb, ((0, 0), (ph, ph), (pw, pw), (0, 0)))
    return xb


def conv_bn_act(x_nhwc, w, bias, *, act=True, out_dtype=jnp.float32,
                ct_pref=256, cot_pref=256):
    """NHWC conv (stride 1, SAME for odd k) + folded-BN bias + optional ReLU."""
    N, H, W, Cin = x_nhwc.shape
    KH, KW, Cin2, Cout = w.shape
    assert Cin == Cin2
    ph, pw = KH // 2, KW // 2

    xb = _pad_spatial(x_nhwc, ph, pw)
    Hp, Wp = H + 2 * ph, W + 2 * pw

    w3 = w.astype(jnp.bfloat16).reshape(KH * KW, Cin, Cout)
    b2 = bias.astype(jnp.float32).reshape(1, Cout)

    ct = _pick_tile(Cin, ct_pref)
    cot = _pick_tile(Cout, cot_pref)
    n_ci, n_co = Cin // ct, Cout // cot

    kernel = functools.partial(_conv_bn_act_kernel,
                               kh=KH, kw=KW, oh=H, ow=W, act=act)

    flops = 2 * N * H * W * KH * KW * Cin * Cout
    bytes_accessed = int(xb.size) * 2 + int(w3.size) * 2 + int(b2.size) * 4 \
        + N * H * W * Cout * jnp.dtype(out_dtype).itemsize

    return pl.pallas_call(
        kernel,
        out_shape=jax.ShapeDtypeStruct((N, H, W, Cout), out_dtype),
        grid_spec=pltpu.PrefetchScalarGridSpec(
            num_scalar_prefetch=0,
            grid=(N, n_co, n_ci),
            in_specs=[
                pl.BlockSpec((1, Hp, Wp, ct), lambda n, j, k: (n, 0, 0, k)),
                pl.BlockSpec((KH * KW, ct, cot), lambda n, j, k: (0, k, j)),
                pl.BlockSpec((1, cot), lambda n, j, k: (0, j)),
            ],
            out_specs=pl.BlockSpec((1, H, W, cot), lambda n, j, k: (n, 0, 0, j)),
            scratch_shapes=[pltpu.VMEM((H * W, cot), jnp.float32)],
        ),
        compiler_params=pltpu.CompilerParams(
            dimension_semantics=("parallel", "parallel", "arbitrary"),
            vmem_limit_bytes=48 * 1024 * 1024,
        ),
        cost_estimate=pl.CostEstimate(flops=flops, transcendentals=0,
                                      bytes_accessed=bytes_accessed),
    )(xb, w3, b2)


def conv3x3_then_1x1(x_nhwc, w1, b1, w2, b2, *, out_dtype=jnp.float32,
                     ct_pref=256):
    """Fused (3x3 conv + BN + ReLU) -> (1x1 conv + BN + ReLU), NHWC."""
    N, H, W, Cin = x_nhwc.shape
    KH, KW, Cin2, Cmid = w1.shape
    assert Cin == Cin2
    assert w2.shape[0] == 1 and w2.shape[1] == 1 and w2.shape[2] == Cmid
    Cout = w2.shape[3]
    ph, pw = KH // 2, KW // 2

    xb = _pad_spatial(x_nhwc, ph, pw)
    Hp, Wp = H + 2 * ph, W + 2 * pw

    w1r = w1.astype(jnp.bfloat16).reshape(KH * KW, Cin, Cmid)
    b1r = b1.astype(jnp.float32).reshape(1, Cmid)
    w2r = w2.astype(jnp.bfloat16).reshape(Cmid, Cout)
    b2r = b2.astype(jnp.float32).reshape(1, Cout)

    ct = _pick_tile(Cin, ct_pref)
    n_ci = Cin // ct

    kernel = functools.partial(_conv3x3_then_1x1_kernel,
                               kh=KH, kw=KW, oh=H, ow=W)

    flops = 2 * N * H * W * (KH * KW * Cin * Cmid + Cmid * Cout)
    bytes_accessed = int(xb.size) * 2 + int(w1r.size) * 2 + int(w2r.size) * 2 \
        + int(b1r.size) * 4 + int(b2r.size) * 4 \
        + N * H * W * Cout * jnp.dtype(out_dtype).itemsize

    return pl.pallas_call(
        kernel,
        out_shape=jax.ShapeDtypeStruct((N, H, W, Cout), out_dtype),
        grid_spec=pltpu.PrefetchScalarGridSpec(
            num_scalar_prefetch=0,
            grid=(N, n_ci),
            in_specs=[
                pl.BlockSpec((1, Hp, Wp, ct), lambda n, k: (n, 0, 0, k)),
                pl.BlockSpec((KH * KW, ct, Cmid), lambda n, k: (0, k, 0)),
                pl.BlockSpec((1, Cmid), lambda n, k: (0, 0)),
                pl.BlockSpec((Cmid, Cout), lambda n, k: (0, 0)),
                pl.BlockSpec((1, Cout), lambda n, k: (0, 0)),
            ],
            out_specs=pl.BlockSpec((1, H, W, Cout), lambda n, k: (n, 0, 0, 0)),
            scratch_shapes=[pltpu.VMEM((H * W, Cmid), jnp.float32)],
        ),
        compiler_params=pltpu.CompilerParams(
            dimension_semantics=("parallel", "arbitrary"),
            vmem_limit_bytes=48 * 1024 * 1024,
        ),
        cost_estimate=pl.CostEstimate(flops=flops, transcendentals=0,
                                      bytes_accessed=bytes_accessed),
    )(xb, w1r, b1r, w2r, b2r)


# ----------------------------------------------------------------------------
# DecoupleLayer composition (NHWC internally, NCHW at the boundary).
# ----------------------------------------------------------------------------
def decouple_layer_forward_nhwc(x_nhwc, params):
    fg0, bg0 = params["fg"][0], params["bg"][0]
    mid = fg0["w"].shape[-1]                       # static (array shape)

    # Fused first CBR of fg & bg: one conv over the shared large input.
    w1 = jnp.concatenate([fg0["w"], bg0["w"]], axis=-1)
    b1 = jnp.concatenate([fg0["b"], bg0["b"]], axis=-1)
    y1 = conv_bn_act(x_nhwc, w1, b1, act=True, out_dtype=jnp.bfloat16)

    heads = {"fg": y1[..., :mid], "bg": y1[..., mid:]}
    outs = []
    for name in ("fg", "bg"):
        p1, p2 = params[name][1], params[name][2]
        # Fused 3x3 CBR + 1x1 CBR: intermediate never round-trips to HBM.
        z = conv3x3_then_1x1(heads[name], p1["w"], p1["b"], p2["w"], p2["b"],
                             out_dtype=jnp.float32)
        outs.append(z)
    return tuple(outs)


def decouple_layer_forward(x_nchw, params):
    """Matches DecoupleLayer.forward: returns (f_fg, f_bg) in NCHW."""
    x_nhwc = jnp.transpose(x_nchw, (0, 2, 3, 1))
    f_fg, f_bg = decouple_layer_forward_nhwc(x_nhwc, params)
    # cbr_uc exists in __init__ but is unused in forward (matches PyTorch).
    return (jnp.transpose(f_fg, (0, 3, 1, 2)),
            jnp.transpose(f_bg, (0, 3, 1, 2)))


# ----------------------------------------------------------------------------
# Deterministic parameter init (mirrors module __init__ shapes; BN folded).
# ----------------------------------------------------------------------------
def _init_cbr(key, in_c, out_c, ksize):
    k1, k2, k3 = jax.random.split(key, 3)
    fan_in = in_c * ksize * ksize
    w = jax.random.normal(k1, (ksize, ksize, in_c, out_c),
                          jnp.float32) / math.sqrt(fan_in)
    gamma = 1.0 + 0.1 * jax.random.normal(k2, (out_c,), jnp.float32)
    beta = 0.1 * jax.random.normal(k3, (out_c,), jnp.float32)
    mean = jnp.zeros((out_c,), jnp.float32)
    var = jnp.ones((out_c,), jnp.float32)
    eps = 1e-5
    scale = gamma / jnp.sqrt(var + eps)
    return {"w": w * scale, "b": beta - mean * scale}   # BN folded offline


def init_decouple_layer(key, in_c=1024, out_c=256, mid=512):
    keys = jax.random.split(key, 9)

    def branch(ks):
        return [_init_cbr(ks[0], in_c, mid, 3),
                _init_cbr(ks[1], mid, out_c, 3),
                _init_cbr(ks[2], out_c, out_c, 1)]

    return {"fg": branch(keys[0:3]),
            "bg": branch(keys[3:6]),
            "uc": branch(keys[6:9])}   # present in __init__, unused in forward


# ----------------------------------------------------------------------------
# Pure-JAX reference (lax conv at matching bf16 precision) for self-test.
# ----------------------------------------------------------------------------
def _q16(a):
    return a.astype(jnp.bfloat16).astype(jnp.float32)


def _ref_cbr(x, w, b, act=True):
    kh, kw = w.shape[0], w.shape[1]
    y = jax.lax.conv_general_dilated(
        x, _q16(w), (1, 1),
        [(kh // 2, kh // 2), (kw // 2, kw // 2)],
        dimension_numbers=("NHWC", "HWIO", "NHWC"))
    y = y + b
    if act:
        y = jnp.maximum(y, 0.0)
    return y


def _ref_forward(x_nchw, params):
    x = _q16(jnp.transpose(x_nchw, (0, 2, 3, 1)))
    outs = []
    for name in ("fg", "bg"):
        z = x
        for i, p in enumerate(params[name]):
            z = _ref_cbr(z, p["w"], p["b"], act=True)
            if i < 2:
                z = _q16(z)   # kernel path keeps bf16 intermediates
        outs.append(jnp.transpose(z, (0, 3, 1, 2)))
    return tuple(outs)


if __name__ == "__main__":
    key = jax.random.PRNGKey(0)
    k_param, k_x = jax.random.split(key)

    # Small stand-ins for the (in_c=1024, mid=512, out_c=256) defaults.
    in_c, mid, out_c = 32, 16, 16
    batch, spatial = 2, 8
    x = jax.random.normal(k_x, (batch, in_c, spatial, spatial), jnp.float32)

    params = init_decouple_layer(k_param, in_c=in_c, out_c=out_c, mid=mid)

    fwd = jax.jit(decouple_layer_forward)
    f_fg, f_bg = fwd(x, params)
    jax.block_until_ready((f_fg, f_bg))

    assert f_fg.shape == (batch, out_c, spatial, spatial)
    assert f_bg.shape == (batch, out_c, spatial, spatial)

    r_fg, r_bg = _ref_forward(x, params)
    assert jnp.allclose(f_fg, r_fg, rtol=3e-2, atol=3e-2), \
        float(jnp.max(jnp.abs(f_fg - r_fg)))
    assert jnp.allclose(f_bg, r_bg, rtol=3e-2, atol=3e-2), \
        float(jnp.max(jnp.abs(f_bg - r_bg)))

    print("KERNEL_OK")
</pallas_src>

<mosaic_0001>
module attributes {stable_mosaic.version = 11 : i64} {
  func.func @_conv_bn_act_kernel(%arg0: i32, %arg1: i32, %arg2: i32, %arg3: memref<1x10x10x32xbf16, #tpu.memory_space<vmem>>, %arg4: memref<9x32x32xbf16, #tpu.memory_space<vmem>>, %arg5: memref<1x32xf32, #tpu.memory_space<vmem>>, %arg6: memref<1x8x8x32xbf16, #tpu.memory_space<vmem>>, %arg7: memref<64x32xf32, #tpu.memory_space<vmem>>) attributes {dimension_semantics = [#tpu.dimension_semantics<parallel>, #tpu.dimension_semantics<parallel>, #tpu.dimension_semantics<arbitrary>], iteration_bounds = array<i64: 2, 1, 1>, scalar_prefetch = 0 : i64, scratch_operands = 1 : i64, tpu.core_type = #tpu.core_type<tc>, window_params = [{transform_indices = @transform_0, window_bounds = array<i64: 1, 10, 10, 32>}, {transform_indices = @transform_1, window_bounds = array<i64: 9, 32, 32>}, {transform_indices = @transform_2, window_bounds = array<i64: 1, 32>}, {transform_indices = @transform_3, window_bounds = array<i64: 1, 8, 8, 32>}]} {
    %c0_i32 = arith.constant 0 : i32
    %0 = arith.cmpi eq, %arg2, %c0_i32 : i32
    %1 = arith.extui %0 : i1 to i32
    %c0_i32_0 = arith.constant 0 : i32
    %2 = arith.cmpi ne, %1, %c0_i32_0 : i32
    scf.if %2 {
      %cst_37 = arith.constant 0.000000e+00 : f32
      %64 = vector.broadcast %cst_37 : f32 to vector<64x32xf32>
      %c0_38 = arith.constant 0 : index
      %c0_39 = arith.constant 0 : index
      %65 = vector.load %arg7[%c0_38, %c0_39] : memref<64x32xf32, #tpu.memory_space<vmem>>, vector<64x32xf32>
      tpu.vector_store %arg7[%c0_38, %c0_39], %64 {strides = array<i32>} : memref<64x32xf32, #tpu.memory_space<vmem>>, vector<64x32xf32>,
    } else {
    }
    %c0 = arith.constant 0 : index
    %c0_1 = arith.constant 0 : index
    %c0_2 = arith.constant 0 : index
    %c0_3 = arith.constant 0 : index
    %3 = vector.load %arg3[%c0, %c0_1, %c0_2, %c0_3] : memref<1x10x10x32xbf16, #tpu.memory_space<vmem>>, vector<1x10x10x32xbf16>
    %4 = vector.shape_cast %3 : vector<1x10x10x32xbf16> to vector<10x10x32xbf16>
    %5 = vector.extract_strided_slice %4 {offsets = [0, 0, 0], sizes = [8, 8, 32], strides = [1, 1, 1]} : vector<10x10x32xbf16> to vector<8x8x32xbf16>
    %6 = vector.shape_cast %5 : vector<8x8x32xbf16> to vector<64x32xbf16>
    %c0_4 = arith.constant 0 : index
    %c0_5 = arith.constant 0 : index
    %c0_6 = arith.constant 0 : index
    %7 = vector.load %arg4[%c0_4, %c0_5, %c0_6] : memref<9x32x32xbf16, #tpu.memory_space<vmem>>, vector<1x32x32xbf16>
    %8 = vector.shape_cast %7 : vector<1x32x32xbf16> to vector<32x32xbf16>
    %cst = arith.constant dense<0.000000e+00> : vector<64x32xf32>
    %9 = tpu.matmul %6, %8, %cst {dimension_numbers = #tpu.dot_dimension_numbers<[1], [0], [0], [1], [0, 0, 1, 1], [], []>} : vector<64x32xbf16>, vector<32x32xbf16>, vector<64x32xf32> -> vector<64x32xf32>
    %10 = vector.extract_strided_slice %4 {offsets = [0, 1, 0], sizes = [8, 8, 32], strides = [1, 1, 1]} : vector<10x10x32xbf16> to vector<8x8x32xbf16>
    %11 = vector.shape_cast %10 : vector<8x8x32xbf16> to vector<64x32xbf16>
    %c1 = arith.constant 1 : index
    %c0_7 = arith.constant 0 : index
    %c0_8 = arith.constant 0 : index
    %12 = vector.load %arg4[%c1, %c0_7, %c0_8] : memref<9x32x32xbf16, #tpu.memory_space<vmem>>, vector<1x32x32xbf16>
    %13 = vector.shape_cast %12 : vector<1x32x32xbf16> to vector<32x32xbf16>
    %cst_9 = arith.constant dense<0.000000e+00> : vector<64x32xf32>
    %14 = tpu.matmul %11, %13, %cst_9 {dimension_numbers = #tpu.dot_dimension_numbers<[1], [0], [0], [1], [0, 0, 1, 1], [], []>} : vector<64x32xbf16>, vector<32x32xbf16>, vector<64x32xf32> -> vector<64x32xf32>
    %15 = arith.addf %9, %14 : vector<64x32xf32>
    %16 = vector.extract_strided_slice %4 {offsets = [0, 2, 0], sizes = [8, 8, 32], strides = [1, 1, 1]} : vector<10x10x32xbf16> to vector<8x8x32xbf16>
    %17 = vector.shape_cast %16 : vector<8x8x32xbf16> to vector<64x32xbf16>
    %c2 = arith.constant 2 : index
    %c0_10 = arith.constant 0 : index
    %c0_11 = arith.constant 0 : index
    %18 = vector.load %arg4[%c2, %c0_10, %c0_11] : memref<9x32x32xbf16, #tpu.memory_space<vmem>>, vector<1x32x32xbf16>
    %19 = vector.shape_cast %18 : vector<1x32x32xbf16> to vector<32x32xbf16>
    %cst_12 = arith.constant dense<0.000000e+00> : vector<64x32xf32>
    %20 = tpu.matmul %17, %19, %cst_12 {dimension_numbers = #tpu.dot_dimension_numbers<[1], [0], [0], [1], [0, 0, 1, 1], [], []>} : vector<64x32xbf16>, vector<32x32xbf16>, vector<64x32xf32> -> vector<64x32xf32>
    %21 = arith.addf %15, %20 : vector<64x32xf32>
    %22 = vector.extract_strided_slice %4 {offsets = [1, 0, 0], sizes = [8, 8, 32], strides = [1, 1, 1]} : vector<10x10x32xbf16> to vector<8x8x32xbf16>
    %23 = vector.shape_cast %22 : vector<8x8x32xbf16> to vector<64x32xbf16>
    %c3 = arith.constant 3 : index
    %c0_13 = arith.constant 0 : index
    %c0_14 = arith.constant 0 : index
    %24 = vector.load %arg4[%c3, %c0_13, %c0_14] : memref<9x32x32xbf16, #tpu.memory_space<vmem>>, vector<1x32x32xbf16>
    %25 = vector.shape_cast %24 : vector<1x32x32xbf16> to vector<32x32xbf16>
    %cst_15 = arith.constant dense<0.000000e+00> : vector<64x32xf32>
    %26 = tpu.matmul %23, %25, %cst_15 {dimension_numbers = #tpu.dot_dimension_numbers<[1], [0], [0], [1], [0, 0, 1, 1], [], []>} : vector<64x32xbf16>, vector<32x32xbf16>, vector<64x32xf32> -> vector<64x32xf32>
    %27 = arith.addf %21, %26 : vector<64x32xf32>
    %28 = vector.extract_strided_slice %4 {offsets = [1, 1, 0], sizes = [8, 8, 32], strides = [1, 1, 1]} : vector<10x10x32xbf16> to vector<8x8x32xbf16>
    %29 = vector.shape_cast %28 : vector<8x8x32xbf16> to vector<64x32xbf16>
    %c4 = arith.constant 4 : index
    %c0_16 = arith.constant 0 : index
    %c0_17 = arith.constant 0 : index
    %30 = vector.load %arg4[%c4, %c0_16, %c0_17] : memref<9x32x32xbf16, #tpu.memory_space<vmem>>, vector<1x32x32xbf16>
    %31 = vector.shape_cast %30 : vector<1x32x32xbf16> to vector<32x32xbf16>
    %cst_18 = arith.constant dense<0.000000e+00> : vector<64x32xf32>
    %32 = tpu.matmul %29, %31, %cst_18 {dimension_numbers = #tpu.dot_dimension_numbers<[1], [0], [0], [1], [0, 0, 1, 1], [], []>} : vector<64x32xbf16>, vector<32x32xbf16>, vector<64x32xf32> -> vector<64x32xf32>
    %33 = arith.addf %27, %32 : vector<64x32xf32>
    %34 = vector.extract_strided_slice %4 {offsets = [1, 2, 0], sizes = [8, 8, 32], strides = [1, 1, 1]} : vector<10x10x32xbf16> to vector<8x8x32xbf16>
    %35 = vector.shape_cast %34 : vector<8x8x32xbf16> to vector<64x32xbf16>
    %c5 = arith.constant 5 : index
    %c0_19 = arith.constant 0 : index
    %c0_20 = arith.constant 0 : index
    %36 = vector.load %arg4[%c5, %c0_19, %c0_20] : memref<9x32x32xbf16, #tpu.memory_space<vmem>>, vector<1x32x32xbf16>
    %37 = vector.shape_cast %36 : vector<1x32x32xbf16> to vector<32x32xbf16>
    %cst_21 = arith.constant dense<0.000000e+00> : vector<64x32xf32>
    %38 = tpu.matmul %35, %37, %cst_21 {dimension_numbers = #tpu.dot_dimension_numbers<[1], [0], [0], [1], [0, 0, 1, 1], [], []>} : vector<64x32xbf16>, vector<32x32xbf16>, vector<64x32xf32> -> vector<64x32xf32>
    %39 = arith.addf %33, %38 : vector<64x32xf32>
    %40 = vector.extract_strided_slice %4 {offsets = [2, 0, 0], sizes = [8, 8, 32], strides = [1, 1, 1]} : vector<10x10x32xbf16> to vector<8x8x32xbf16>
    %41 = vector.shape_cast %40 : vector<8x8x32xbf16> to vector<64x32xbf16>
    %c6 = arith.constant 6 : index
    %c0_22 = arith.constant 0 : index
    %c0_23 = arith.constant 0 : index
    %42 = vector.load %arg4[%c6, %c0_22, %c0_23] : memref<9x32x32xbf16, #tpu.memory_space<vmem>>, vector<1x32x32xbf16>
    %43 = vector.shape_cast %42 : vector<1x32x32xbf16> to vector<32x32xbf16>
    %cst_24 = arith.constant dense<0.000000e+00> : vector<64x32xf32>
    %44 = tpu.matmul %41, %43, %cst_24 {dimension_numbers = #tpu.dot_dimension_numbers<[1], [0], [0], [1], [0, 0, 1, 1], [], []>} : vector<64x32xbf16>, vector<32x32xbf16>, vector<64x32xf32> -> vector<64x32xf32>
    %45 = arith.addf %39, %44 : vector<64x32xf32>
    %46 = vector.extract_strided_slice %4 {offsets = [2, 1, 0], sizes = [8, 8, 32], strides = [1, 1, 1]} : vector<10x10x32xbf16> to vector<8x8x32xbf16>
    %47 = vector.shape_cast %46 : vector<8x8x32xbf16> to vector<64x32xbf16>
    %c7 = arith.constant 7 : index
    %c0_25 = arith.constant 0 : index
    %c0_26 = arith.constant 0 : index
    %48 = vector.load %arg4[%c7, %c0_25, %c0_26] : memref<9x32x32xbf16, #tpu.memory_space<vmem>>, vector<1x32x32xbf16>
    %49 = vector.shape_cast %48 : vector<1x32x32xbf16> to vector<32x32xbf16>
    %cst_27 = arith.constant dense<0.000000e+00> : vector<64x32xf32>
    %50 = tpu.matmul %47, %49, %cst_27 {dimension_numbers = #tpu.dot_dimension_numbers<[1], [0], [0], [1], [0, 0, 1, 1], [], []>} : vector<64x32xbf16>, vector<32x32xbf16>, vector<64x32xf32> -> vector<64x32xf32>
    %51 = arith.addf %45, %50 : vector<64x32xf32>
    %52 = vector.extract_strided_slice %4 {offsets = [2, 2, 0], sizes = [8, 8, 32], strides = [1, 1, 1]} : vector<10x10x32xbf16> to vector<8x8x32xbf16>
    %53 = vector.shape_cast %52 : vector<8x8x32xbf16> to vector<64x32xbf16>
    %c8 = arith.constant 8 : index
    %c0_28 = arith.constant 0 : index
    %c0_29 = arith.constant 0 : index
    %54 = vector.load %arg4[%c8, %c0_28, %c0_29] : memref<9x32x32xbf16, #tpu.memory_space<vmem>>, vector<1x32x32xbf16>
    %55 = vector.shape_cast %54 : vector<1x32x32xbf16> to vector<32x32xbf16>
    %cst_30 = arith.constant dense<0.000000e+00> : vector<64x32xf32>
    %56 = tpu.matmul %53, %55, %cst_30 {dimension_numbers = #tpu.dot_dimension_numbers<[1], [0], [0], [1], [0, 0, 1, 1], [], []>} : vector<64x32xbf16>, vector<32x32xbf16>, vector<64x32xf32> -> vector<64x32xf32>
    %57 = arith.addf %51, %56 : vector<64x32xf32>
    %c0_31 = arith.constant 0 : index
    %c0_32 = arith.constant 0 : index
    %58 = vector.load %arg7[%c0_31, %c0_32] : memref<64x32xf32, #tpu.memory_space<vmem>>, vector<64x32xf32>
    %59 = arith.addf %58, %57 : vector<64x32xf32>
    %c0_33 = arith.constant 0 : index
    %c0_34 = arith.constant 0 : index
    %60 = vector.load %arg7[%c0_33, %c0_34] : memref<64x32xf32, #tpu.memory_space<vmem>>, vector<64x32xf32>
    tpu.vector_store %arg7[%c0_33, %c0_34], %59 {strides = array<i32>} : memref<64x32xf32, #tpu.memory_space<vmem>>, vector<64x32xf32>,
    %c0_i32_35 = arith.constant 0 : i32
    %61 = arith.cmpi eq, %arg2, %c0_i32_35 : i32
    %62 = arith.extui %61 : i1 to i32
    %c0_i32_36 = arith.constant 0 : i32
    %63 = arith.cmpi ne, %62, %c0_i32_36 : i32
    scf.if %63 {
      %c0_37 = arith.constant 0 : index
      %c0_38 = arith.constant 0 : index
      %64 = vector.load %arg7[%c0_37, %c0_38] : memref<64x32xf32, #tpu.memory_space<vmem>>, vector<64x32xf32>
      %c0_39 = arith.constant 0 : index
      %c0_40 = arith.constant 0 : index
      %65 = vector.load %arg5[%c0_39, %c0_40] : memref<1x32xf32, #tpu.memory_space<vmem>>, vector<1x32xf32>
      %66 = vector.broadcast %65 : vector<1x32xf32> to vector<64x32xf32>
      %67 = arith.addf %64, %66 : vector<64x32xf32>
      %cst_41 = arith.constant 0.000000e+00 : f32
      %68 = vector.broadcast %cst_41 : f32 to vector<64x32xf32>
      %69 = arith.maximumf %67, %68 : vector<64x32xf32>
      %70 = vector.shape_cast %69 : vector<64x32xf32> to vector<1x8x8x32xf32>
      %71 = arith.truncf %70 : vector<1x8x8x32xf32> to vector<1x8x8x32xbf16>
      %c0_42 = arith.constant 0 : index
      %c0_43 = arith.constant 0 : index
      %c0_44 = arith.constant 0 : index
      %c0_45 = arith.constant 0 : index
      %72 = vector.load %arg6[%c0_42, %c0_43, %c0_44, %c0_45] : memref<1x8x8x32xbf16, #tpu.memory_space<vmem>>, vector<1x8x8x32xbf16>
      tpu.vector_store %arg6[%c0_42, %c0_43, %c0_44, %c0_45], %71 {strides = array<i32>} : memref<1x8x8x32xbf16, #tpu.memory_space<vmem>>, vector<1x8x8x32xbf16>,
    } else {
    }
    return
  }
  func.func @transform_0(%arg0: i32, %arg1: i32, %arg2: i32) -> (i32, i32, i32, i32) {
    %c0_i32 = arith.constant 0 : i32
    %c0_i32_0 = arith.constant 0 : i32
    %c0_i32_1 = arith.constant 0 : i32
    return %arg0, %c0_i32, %c0_i32_0, %arg2 : i32, i32, i32, i32
  }
  func.func @transform_1(%arg0: i32, %arg1: i32, %arg2: i32) -> (i32, i32, i32) {
    %c0_i32 = arith.constant 0 : i32
    %c0_i32_0 = arith.constant 0 : i32
    return %c0_i32, %arg2, %arg1 : i32, i32, i32
  }
  func.func @transform_2(%arg0: i32, %arg1: i32, %arg2: i32) -> (i32, i32) {
    %c0_i32 = arith.constant 0 : i32
    %c0_i32_0 = arith.constant 0 : i32
    return %c0_i32, %arg1 : i32, i32
  }
  func.func @transform_3(%arg0: i32, %arg1: i32, %arg2: i32) -> (i32, i32, i32, i32) {
    %c0_i32 = arith.constant 0 : i32
    %c0_i32_0 = arith.constant 0 : i32
    %c0_i32_1 = arith.constant 0 : i32
    return %arg0, %c0_i32, %c0_i32_0, %arg1 : i32, i32, i32, i32
  }
}

module attributes {stable_mosaic.version = 11 : i64} {
  func.func @_conv3x3_then_1x1_kernel(%arg0: i32, %arg1: i32, %arg2: memref<1x10x10x16xbf16, #tpu.memory_space<vmem>>, %arg3: memref<9x16x16xbf16, #tpu.memory_space<vmem>>, %arg4: memref<1x16xf32, #tpu.memory_space<vmem>>, %arg5: memref<16x16xbf16, #tpu.memory_space<vmem>>, %arg6: memref<1x16xf32, #tpu.memory_space<vmem>>, %arg7: memref<1x8x8x16xf32, #tpu.memory_space<vmem>>, %arg8: memref<64x16xf32, #tpu.memory_space<vmem>>) attributes {dimension_semantics = [#tpu.dimension_semantics<parallel>, #tpu.dimension_semantics<arbitrary>], iteration_bounds = array<i64: 2, 1>, scalar_prefetch = 0 : i64, scratch_operands = 1 : i64, tpu.core_type = #tpu.core_type<tc>, window_params = [{transform_indices = @transform_0, window_bounds = array<i64: 1, 10, 10, 16>}, {transform_indices = @transform_1, window_bounds = array<i64: 9, 16, 16>}, {pipeline_mode = #tpu.pipeline_mode<synchronous>, transform_indices = @transform_2, window_bounds = array<i64: 1, 16>}, {pipeline_mode = #tpu.pipeline_mode<synchronous>, transform_indices = @transform_3, window_bounds = array<i64: 16, 16>}, {pipeline_mode = #tpu.pipeline_mode<synchronous>, transform_indices = @transform_4, window_bounds = array<i64: 1, 16>}, {transform_indices = @transform_5, window_bounds = array<i64: 1, 8, 8, 16>}]} {
    %c0_i32 = arith.constant 0 : i32
    %0 = arith.cmpi eq, %arg1, %c0_i32 : i32
    %1 = arith.extui %0 : i1 to i32
    %c0_i32_0 = arith.constant 0 : i32
    %2 = arith.cmpi ne, %1, %c0_i32_0 : i32
    scf.if %2 {
      %cst_37 = arith.constant 0.000000e+00 : f32
      %64 = vector.broadcast %cst_37 : f32 to vector<64x16xf32>
      %c0_38 = arith.constant 0 : index
      %c0_39 = arith.constant 0 : index
      %65 = vector.load %arg8[%c0_38, %c0_39] : memref<64x16xf32, #tpu.memory_space<vmem>>, vector<64x16xf32>
      tpu.vector_store %arg8[%c0_38, %c0_39], %64 {strides = array<i32>} : memref<64x16xf32, #tpu.memory_space<vmem>>, vector<64x16xf32>,
    } else {
    }
    %c0 = arith.constant 0 : index
    %c0_1 = arith.constant 0 : index
    %c0_2 = arith.constant 0 : index
    %c0_3 = arith.constant 0 : index
    %3 = vector.load %arg2[%c0, %c0_1, %c0_2, %c0_3] : memref<1x10x10x16xbf16, #tpu.memory_space<vmem>>, vector<1x10x10x16xbf16>
    %4 = vector.shape_cast %3 : vector<1x10x10x16xbf16> to vector<10x10x16xbf16>
    %5 = vector.extract_strided_slice %4 {offsets = [0, 0, 0], sizes = [8, 8, 16], strides = [1, 1, 1]} : vector<10x10x16xbf16> to vector<8x8x16xbf16>
    %6 = vector.shape_cast %5 : vector<8x8x16xbf16> to vector<64x16xbf16>
    %c0_4 = arith.constant 0 : index
    %c0_5 = arith.constant 0 : index
    %c0_6 = arith.constant 0 : index
    %7 = vector.load %arg3[%c0_4, %c0_5, %c0_6] : memref<9x16x16xbf16, #tpu.memory_space<vmem>>, vector<1x16x16xbf16>
    %8 = vector.shape_cast %7 : vector<1x16x16xbf16> to vector<16x16xbf16>
    %cst = arith.constant dense<0.000000e+00> : vector<64x16xf32>
    %9 = tpu.matmul %6, %8, %cst {dimension_numbers = #tpu.dot_dimension_numbers<[1], [0], [0], [1], [0, 0, 1, 1], [], []>} : vector<64x16xbf16>, vector<16x16xbf16>, vector<64x16xf32> -> vector<64x16xf32>
    %10 = vector.extract_strided_slice %4 {offsets = [0, 1, 0], sizes = [8, 8, 16], strides = [1, 1, 1]} : vector<10x10x16xbf16> to vector<8x8x16xbf16>
    %11 = vector.shape_cast %10 : vector<8x8x16xbf16> to vector<64x16xbf16>
    %c1 = arith.constant 1 : index
    %c0_7 = arith.constant 0 : index
    %c0_8 = arith.constant 0 : index
    %12 = vector.load %arg3[%c1, %c0_7, %c0_8] : memref<9x16x16xbf16, #tpu.memory_space<vmem>>, vector<1x16x16xbf16>
    %13 = vector.shape_cast %12 : vector<1x16x16xbf16> to vector<16x16xbf16>
    %cst_9 = arith.constant dense<0.000000e+00> : vector<64x16xf32>
    %14 = tpu.matmul %11, %13, %cst_9 {dimension_numbers = #tpu.dot_dimension_numbers<[1], [0], [0], [1], [0, 0, 1, 1], [], []>} : vector<64x16xbf16>, vector<16x16xbf16>, vector<64x16xf32> -> vector<64x16xf32>
    %15 = arith.addf %9, %14 : vector<64x16xf32>
    %16 = vector.extract_strided_slice %4 {offsets = [0, 2, 0], sizes = [8, 8, 16], strides = [1, 1, 1]} : vector<10x10x16xbf16> to vector<8x8x16xbf16>
    %17 = vector.shape_cast %16 : vector<8x8x16xbf16> to vector<64x16xbf16>
    %c2 = arith.constant 2 : index
    %c0_10 = arith.constant 0 : index
    %c0_11 = arith.constant 0 : index
    %18 = vector.load %arg3[%c2, %c0_10, %c0_11] : memref<9x16x16xbf16, #tpu.memory_space<vmem>>, vector<1x16x16xbf16>
    %19 = vector.shape_cast %18 : vector<1x16x16xbf16> to vector<16x16xbf16>
    %cst_12 = arith.constant dense<0.000000e+00> : vector<64x16xf32>
    %20 = tpu.matmul %17, %19, %cst_12 {dimension_numbers = #tpu.dot_dimension_numbers<[1], [0], [0], [1], [0, 0, 1, 1], [], []>} : vector<64x16xbf16>, vector<16x16xbf16>, vector<64x16xf32> -> vector<64x16xf32>
    %21 = arith.addf %15, %20 : vector<64x16xf32>
    %22 = vector.extract_strided_slice %4 {offsets = [1, 0, 0], sizes = [8, 8, 16], strides = [1, 1, 1]} : vector<10x10x16xbf16> to vector<8x8x16xbf16>
    %23 = vector.shape_cast %22 : vector<8x8x16xbf16> to vector<64x16xbf16>
    %c3 = arith.constant 3 : index
    %c0_13 = arith.constant 0 : index
    %c0_14 = arith.constant 0 : index
    %24 = vector.load %arg3[%c3, %c0_13, %c0_14] : memref<9x16x16xbf16, #tpu.memory_space<vmem>>, vector<1x16x16xbf16>
    %25 = vector.shape_cast %24 : vector<1x16x16xbf16> to vector<16x16xbf16>
    %cst_15 = arith.constant dense<0.000000e+00> : vector<64x16xf32>
    %26 = tpu.matmul %23, %25, %cst_15 {dimension_numbers = #tpu.dot_dimension_numbers<[1], [0], [0], [1], [0, 0, 1, 1], [], []>} : vector<64x16xbf16>, vector<16x16xbf16>, vector<64x16xf32> -> vector<64x16xf32>
    %27 = arith.addf %21, %26 : vector<64x16xf32>
    %28 = vector.extract_strided_slice %4 {offsets = [1, 1, 0], sizes = [8, 8, 16], strides = [1, 1, 1]} : vector<10x10x16xbf16> to vector<8x8x16xbf16>
    %29 = vector.shape_cast %28 : vector<8x8x16xbf16> to vector<64x16xbf16>
    %c4 = arith.constant 4 : index
    %c0_16 = arith.constant 0 : index
    %c0_17 = arith.constant 0 : index
    %30 = vector.load %arg3[%c4, %c0_16, %c0_17] : memref<9x16x16xbf16, #tpu.memory_space<vmem>>, vector<1x16x16xbf16>
    %31 = vector.shape_cast %30 : vector<1x16x16xbf16> to vector<16x16xbf16>
    %cst_18 = arith.constant dense<0.000000e+00> : vector<64x16xf32>
    %32 = tpu.matmul %29, %31, %cst_18 {dimension_numbers = #tpu.dot_dimension_numbers<[1], [0], [0], [1], [0, 0, 1, 1], [], []>} : vector<64x16xbf16>, vector<16x16xbf16>, vector<64x16xf32> -> vector<64x16xf32>
    %33 = arith.addf %27, %32 : vector<64x16xf32>
    %34 = vector.extract_strided_slice %4 {offsets = [1, 2, 0], sizes = [8, 8, 16], strides = [1, 1, 1]} : vector<10x10x16xbf16> to vector<8x8x16xbf16>
    %35 = vector.shape_cast %34 : vector<8x8x16xbf16> to vector<64x16xbf16>
    %c5 = arith.constant 5 : index
    %c0_19 = arith.constant 0 : index
    %c0_20 = arith.constant 0 : index
    %36 = vector.load %arg3[%c5, %c0_19, %c0_20] : memref<9x16x16xbf16, #tpu.memory_space<vmem>>, vector<1x16x16xbf16>
    %37 = vector.shape_cast %36 : vector<1x16x16xbf16> to vector<16x16xbf16>
    %cst_21 = arith.constant dense<0.000000e+00> : vector<64x16xf32>
    %38 = tpu.matmul %35, %37, %cst_21 {dimension_numbers = #tpu.dot_dimension_numbers<[1], [0], [0], [1], [0, 0, 1, 1], [], []>} : vector<64x16xbf16>, vector<16x16xbf16>, vector<64x16xf32> -> vector<64x16xf32>
    %39 = arith.addf %33, %38 : vector<64x16xf32>
    %40 = vector.extract_strided_slice %4 {offsets = [2, 0, 0], sizes = [8, 8, 16], strides = [1, 1, 1]} : vector<10x10x16xbf16> to vector<8x8x16xbf16>
    %41 = vector.shape_cast %40 : vector<8x8x16xbf16> to vector<64x16xbf16>
    %c6 = arith.constant 6 : index
    %c0_22 = arith.constant 0 : index
    %c0_23 = arith.constant 0 : index
    %42 = vector.load %arg3[%c6, %c0_22, %c0_23] : memref<9x16x16xbf16, #tpu.memory_space<vmem>>, vector<1x16x16xbf16>
    %43 = vector.shape_cast %42 : vector<1x16x16xbf16> to vector<16x16xbf16>
    %cst_24 = arith.constant dense<0.000000e+00> : vector<64x16xf32>
    %44 = tpu.matmul %41, %43, %cst_24 {dimension_numbers = #tpu.dot_dimension_numbers<[1], [0], [0], [1], [0, 0, 1, 1], [], []>} : vector<64x16xbf16>, vector<16x16xbf16>, vector<64x16xf32> -> vector<64x16xf32>
    %45 = arith.addf %39, %44 : vector<64x16xf32>
    %46 = vector.extract_strided_slice %4 {offsets = [2, 1, 0], sizes = [8, 8, 16], strides = [1, 1, 1]} : vector<10x10x16xbf16> to vector<8x8x16xbf16>
    %47 = vector.shape_cast %46 : vector<8x8x16xbf16> to vector<64x16xbf16>
    %c7 = arith.constant 7 : index
    %c0_25 = arith.constant 0 : index
    %c0_26 = arith.constant 0 : index
    %48 = vector.load %arg3[%c7, %c0_25, %c0_26] : memref<9x16x16xbf16, #tpu.memory_space<vmem>>, vector<1x16x16xbf16>
    %49 = vector.shape_cast %48 : vector<1x16x16xbf16> to vector<16x16xbf16>
    %cst_27 = arith.constant dense<0.000000e+00> : vector<64x16xf32>
    %50 = tpu.matmul %47, %49, %cst_27 {dimension_numbers = #tpu.dot_dimension_numbers<[1], [0], [0], [1], [0, 0, 1, 1], [], []>} : vector<64x16xbf16>, vector<16x16xbf16>, vector<64x16xf32> -> vector<64x16xf32>
    %51 = arith.addf %45, %50 : vector<64x16xf32>
    %52 = vector.extract_strided_slice %4 {offsets = [2, 2, 0], sizes = [8, 8, 16], strides = [1, 1, 1]} : vector<10x10x16xbf16> to vector<8x8x16xbf16>
    %53 = vector.shape_cast %52 : vector<8x8x16xbf16> to vector<64x16xbf16>
    %c8 = arith.constant 8 : index
    %c0_28 = arith.constant 0 : index
    %c0_29 = arith.constant 0 : index
    %54 = vector.load %arg3[%c8, %c0_28, %c0_29] : memref<9x16x16xbf16, #tpu.memory_space<vmem>>, vector<1x16x16xbf16>
    %55 = vector.shape_cast %54 : vector<1x16x16xbf16> to vector<16x16xbf16>
    %cst_30 = arith.constant dense<0.000000e+00> : vector<64x16xf32>
    %56 = tpu.matmul %53, %55, %cst_30 {dimension_numbers = #tpu.dot_dimension_numbers<[1], [0], [0], [1], [0, 0, 1, 1], [], []>} : vector<64x16xbf16>, vector<16x16xbf16>, vector<64x16xf32> -> vector<64x16xf32>
    %57 = arith.addf %51, %56 : vector<64x16xf32>
    %c0_31 = arith.constant 0 : index
    %c0_32 = arith.constant 0 : index
    %58 = vector.load %arg8[%c0_31, %c0_32] : memref<64x16xf32, #tpu.memory_space<vmem>>, vector<64x16xf32>
    %59 = arith.addf %58, %57 : vector<64x16xf32>
    %c0_33 = arith.constant 0 : index
    %c0_34 = arith.constant 0 : index
    %60 = vector.load %arg8[%c0_33, %c0_34] : memref<64x16xf32, #tpu.memory_space<vmem>>, vector<64x16xf32>
    tpu.vector_store %arg8[%c0_33, %c0_34], %59 {strides = array<i32>} : memref<64x16xf32, #tpu.memory_space<vmem>>, vector<64x16xf32>,
    %c0_i32_35 = arith.constant 0 : i32
    %61 = arith.cmpi eq, %arg1, %c0_i32_35 : i32
    %62 = arith.extui %61 : i1 to i32
    %c0_i32_36 = arith.constant 0 : i32
    %63 = arith.cmpi ne, %62, %c0_i32_36 : i32
    scf.if %63 {
      %c0_37 = arith.constant 0 : index
      %c0_38 = arith.constant 0 : index
      %64 = vector.load %arg8[%c0_37, %c0_38] : memref<64x16xf32, #tpu.memory_space<vmem>>, vector<64x16xf32>
      %c0_39 = arith.constant 0 : index
      %c0_40 = arith.constant 0 : index
      %65 = vector.load %arg4[%c0_39, %c0_40] : memref<1x16xf32, #tpu.memory_space<vmem>>, vector<1x16xf32>
      %66 = vector.broadcast %65 : vector<1x16xf32> to vector<64x16xf32>
      %67 = arith.addf %64, %66 : vector<64x16xf32>
      %cst_41 = arith.constant 0.000000e+00 : f32
      %68 = vector.broadcast %cst_41 : f32 to vector<64x16xf32>
      %69 = arith.maximumf %67, %68 : vector<64x16xf32>
      %70 = arith.truncf %69 : vector<64x16xf32> to vector<64x16xbf16>
      %c0_42 = arith.constant 0 : index
      %c0_43 = arith.constant 0 : index
      %71 = vector.load %arg5[%c0_42, %c0_43] : memref<16x16xbf16, #tpu.memory_space<vmem>>, vector<16x16xbf16>
      %cst_44 = arith.constant dense<0.000000e+00> : vector<64x16xf32>
      %72 = tpu.matmul %70, %71, %cst_44 {dimension_numbers = #tpu.dot_dimension_numbers<[1], [0], [0], [1], [0, 0, 1, 1], [], []>} : vector<64x16xbf16>, vector<16x16xbf16>, vector<64x16xf32> -> vector<64x16xf32>
      %c0_45 = arith.constant 0 : index
      %c0_46 = arith.constant 0 : index
      %73 = vector.load %arg6[%c0_45, %c0_46] : memref<1x16xf32, #tpu.memory_space<vmem>>, vector<1x16xf32>
      %74 = vector.broadcast %73 : vector<1x16xf32> to vector<64x16xf32>
      %75 = arith.addf %72, %74 : vector<64x16xf32>
      %cst_47 = arith.constant 0.000000e+00 : f32
      %76 = vector.broadcast %cst_47 : f32 to vector<64x16xf32>
      %77 = arith.maximumf %75, %76 : vector<64x16xf32>
      %78 = vector.shape_cast %77 : vector<64x16xf32> to vector<1x8x8x16xf32>
      %c0_48 = arith.constant 0 : index
      %c0_49 = arith.constant 0 : index
      %c0_50 = arith.constant 0 : index
      %c0_51 = arith.constant 0 : index
      %79 = vector.load %arg7[%c0_48, %c0_49, %c0_50, %c0_51] : memref<1x8x8x16xf32, #tpu.memory_space<vmem>>, vector<1x8x8x16xf32>
      tpu.vector_store %arg7[%c0_48, %c0_49, %c0_50, %c0_51], %78 {strides = array<i32>} : memref<1x8x8x16xf32, #tpu.memory_space<vmem>>, vector<1x8x8x16xf32>,
    } else {
    }
    return
  }
  func.func @transform_0(%arg0: i32, %arg1: i32) -> (i32, i32, i32, i32) {
    %c0_i32 = arith.constant 0 : i32
    %c0_i32_0 = arith.constant 0 : i32
    %c0_i32_1 = arith.constant 0 : i32
    return %arg0, %c0_i32, %c0_i32_0, %arg1 : i32, i32, i32, i32
  }
  func.func @transform_1(%arg0: i32, %arg1: i32) -> (i32, i32, i32) {
    %c0_i32 = arith.constant 0 : i32
    %c0_i32_0 = arith.constant 0 : i32
    %c0_i32_1 = arith.constant 0 : i32
    return %c0_i32, %arg1, %c0_i32_0 : i32, i32, i32
  }
  func.func @transform_2(%arg0: i32, %arg1: i32) -> (i32, i32) {
    %c0_i32 = arith.constant 0 : i32
    %c0_i32_0 = arith.constant 0 : i32
    %c0_i32_1 = arith.constant 0 : i32
    return %c0_i32, %c0_i32_0 : i32, i32
  }
  func.func @transform_3(%arg0: i32, %arg1: i32) -> (i32, i32) {
    %c0_i32 = arith.constant 0 : i32
    %c0_i32_0 = arith.constant 0 : i32
    %c0_i32_1 = arith.constant 0 : i32
    return %c0_i32, %c0_i32_0 : i32, i32
  }
  func.func @transform_4(%arg0: i32, %arg1: i32) -> (i32, i32) {
    %c0_i32 = arith.constant 0 : i32
    %c0_i32_0 = arith.constant 0 : i32
    %c0_i32_1 = arith.constant 0 : i32
    return %c0_i32, %c0_i32_0 : i32, i32
  }
  func.func @transform_5(%arg0: i32, %arg1: i32) -> (i32, i32, i32, i32) {
    %c0_i32 = arith.constant 0 : i32
    %c0_i32_0 = arith.constant 0 : i32
    %c0_i32_1 = arith.constant 0 : i32
    %c0_i32_2 = arith.constant 0 : i32
    return %arg0, %c0_i32, %c0_i32_0, %c0_i32_1 : i32, i32, i32, i32
  }
}

</mosaic_0001>

<bundles_post_ra>
// kernel: decouple_layer_forward.5
= control target key start
LH: loop header
LB: loop body
LE: loop exit
PB: predicated region body
PF: predicated region fallthrough
CT: control target
= control target key end

     0   :  { %10 = vsyncpa [#allocation4], 0  ;;  %s2089_s0 = inlined_call_operand.vmem [shape: bf16[2,10,10,16], index: 0, kind: input, shape index: {}]   ;;  %s2090_s1 = inlined_call_operand.vmem [shape: bf16[9,16,16], index: 1, kind: input, shape index: {}]   ;;  %s2091_s2 = inlined_call_operand.vmem [shape: f32[1,16], index: 2, kind: input, shape index: {}]   ;;  %s2092_s3 = inlined_call_operand.vmem [shape: bf16[16,16], index: 3, kind: input, shape index: {}]   ;;  %s2093_s4 = inlined_call_operand.vmem [shape: f32[1,16], index: 4, kind: input, shape index: {}]   ;;  %s2094_s5 = inlined_call_operand.hbm [shape: f32[2,8,8,16], index: 5, kind: output, shape index: {}]  }
   0x1   :  { %12 = vsyncpa [#allocation4 + $0x1], 0  ;;  %s1585_s18 = smov 0   ;;  %s1587_s19 = smov 0  }
   0x2   :  { %s1589_s20 = smov 0   ;;  %s1591_s21 = smov 0  }
   0x3   :  { %s1593_s22 = smov 0   ;;  %s1595_s23 = smov 0  }
   0x4 LB: > { %s1279_s24 = sadd.s32 4294967295, %s1550_s23   ;;  %s1280_s25 = sadd.s32 4294967294, %s1550_s23   ;;  %s1550_s23 = sphi %s1595_s23, %s18_s23   ;;  %s1546_s22 = sphi %s1593_s22, %s2105_s22   ;;  %s1542_s21 = sphi %s1591_s21, %s2104_s21   ;;  %s1538_s20 = sphi %s1589_s20, %s2103_s20   ;;  %s1534_s19 = sphi %s1587_s19, %s2102_s19   ;;  %s1530_s18 = sphi %s1585_s18, %s2101_s18  }
   0x5   : > { %s30_s26 = sadd.s32 1, %s1546_s22  ;;  %s154_s27 = sadd.s32 1, %s1538_s20 }
   0x6   : > { %p32_p0 = scmp.ge.s32.totalorder %s30_s26, 2  ;;  %p164_p1 = scmp.ne.s32.totalorder %s1538_s20, %s1534_s19 }
   0x7   : > { %p165_p2 = scmp.eq.s32.totalorder %s1279_s24, 1  ;;  %p170_p3 = scmp.ne.s32.totalorder %s1534_s19, %s1530_s18 }
   0x8   : > { %s2107_s26 = smov (%p32_p0, %s30_s26), 0  ;;  %p171_p5 = scmp.eq.s32.totalorder %s1280_s25, 1 }
   0x9   : > { %p1625_p4 = por %p165_p2, %p164_p1  ;;  %s151_s29 = ssub.s32 %s1546_s22, %s2107_s26 }
   0xa   : > { %p1284_p6 = scmp.ge.s32.totalorder %s1550_s23, 1  ;;  %p152_p7 = scmp.eq.s32.totalorder %s151_s29, 0 }
   0xb   : > { %p1632_p8 = por %p171_p5, %p170_p3  ;;  %p218_p9 = scmp.lt.s32.totalorder %s1550_s23, 3 }
   0xc   : > { %s1638_s6 = scalar_select %p152_p7, %s1538_s20, %s154_s27  }
   0xd   : > { %p219_p10 = pnand %p1284_p6, %p218_p9 }
   0xe   : > { %p254_p11 = scmp.lt.s32.totalorder (!%p219_p10), %s1542_s21, 1  ;;  %s251_s25 = sand.u32 (!%p219_p10), 1, %s1534_s19  }
   0xf   : > { %222 = sbr.rel (%p219_p10) target bundleno = 488 (0x1e8), region = 40  ;;  %s1285_s7 = sshll.u32 (!%p219_p10), %s251_s25, 6 }
  0x10   : > { %s2032_s8 = scalar_lea.vmem (!%p219_p10), [#allocation3], %s1285_s7  ;;  %s1408_s9 = sshll.u32 (!%p219_p10), %s1542_s21, 6 }
  0x11   : > { %s1184_s12 = scalar_lea.hbm (!%p219_p10), %s2094_s5, %s1408_s9  ;;  %s1185_s13 = sshll.u32 (!%p219_p10), %s2032_s8, 4  ;;  %s1186_s13 = int_to_ptr.vmem [resolvable:$true] %s1185_s13 }
  0x12   : > { %s1187_s14 = sshll.u32 (!%p219_p10), %s1184_s12, 4  ;;  %s1173_s15 = scalar_lea.sflag (!%p219_p10), [#allocation4], %s251_s25  ;;  %s1188_s14 = int_to_ptr.hbm [resolvable:$true] %s1187_s14 }
  0x13   : > { %s1492_s27 = scalar_lea.hbm (!%p219_p10), %s2094_s5, 128 }
  0x14   : > { %v1398_v0 = vld [vmem:[%s2090_s1] sm:$0xff]  ;;  %v1399_v1 = vld [vmem:[%s2090_s1 + $0x8] sm:$0xff]  ;;  %v1400_v2 = vld [vmem:[%s2090_s1 + $0x10] sm:$0xff]  ;;  %s255_s17 = scalar_select %p254_p11, %s1542_s21, 1  ;;  %vm273_vm0 = vcmask 130048   ;;  %vm557_vm4 = vcmask 1042432  }
  0x15   : > { %v1401_v3 = vld [vmem:[%s2090_s1 + $0x18] sm:$0xff]  ;;  %v1402_v4 = vld [vmem:[%s2090_s1 + $0x20] sm:$0xff]  ;;  %1410 = vmatpush.bf16.msra.mxu3 %v1398_v0  ;;  %1409 = vmatpush.bf16.msra.mxu2 %v1399_v1  ;;  %vm304_vm1 = vsmask.f32 3328  ;;  %vm305_vm2 = vsmask.f32 7440 }
  0x16   : > { %460 = vmatpush.bf16.msra.mxu0 %v1399_v1  ;;  %527 = vmatpush.bf16.msra.mxu1 %v1398_v0  ;;  %s1411_s24 = smul.u32 80, %s255_s17  ;;  %vm1707_vm3 = vmor %vm304_vm1, %vm305_vm2  ;;  %vm558_vm5 = vcmask 1046532   ;;  %s1486_s21 = sshra.s32 %s1188_s14, 4  ;;  %s1487_s21 = int_to_ptr.hbm [resolvable:$true] %s1486_s21 }
  0x17   : > { %vm1833_vm6 = vmor %vm557_vm4, %vm558_vm5  ;;  %s1488_s16 = scalar_lea.hbm %s1487_s21, 64  ;;  %p1493_p1 = scmp.lt.s32.totalorder %s1487_s21, %s2094_s5 }
  0x18   : > { %s1660_s29 = scalar_lea.vmem %s2089_s0, %s1411_s24  ;;  %p1489_p12 = scmp.ne.s32.totalorder %s1487_s21, %s1488_s16 }
  0x19   : > { %632 = vmatpush.bf16.msrb.mxu2 %v1400_v2  ;;  %696 = vmatpush.bf16.msrb.mxu3 %v1401_v3  ;;  %v1663_v5 = vld [vmem:[%s1660_s29 + $0x20] sm:$0xf]  ;;  %v1666_v6 = vld [vmem:[%s1660_s29 + $0x28] sm:$0xf]  ;;  %v1669_v7 = vld [vmem:[%s1660_s29 + $0x24] sm:$0x1]  ;;  %p1494_p2 = scmp.lt.s32.totalorder %s1492_s27, %s1488_s16 }
  0x1a   : > { %773 = vmatpush.bf16.msrb.mxu0 %v1402_v4  ;;  %v494_v8 = vunpack.c.l.b16 %v1663_v5  ;;  %v495_v9 = vunpack.c.l.b16 %v1666_v6  ;;  %v1674_v10 = vld [vmem:[%s1660_s29 + $0x2c] sm:$0x1]  ;;  %v364_v11 = vshrl.u32 %v1663_v5, 16  ;;  %v367_v12 = vshll.u32 %v1663_v5, 16  ;;  %v1679_v13 = vld [vmem:[%s1660_s29] sm:$0xf]  ;;  %p1490_p13 = pnand %p1489_p12, %p1625_p4 }
  0x1b   : > { %v373_v14 = vshll.u32 %v1669_v7, 16  ;;  %v378_v15 = vshrl.u32 %v1666_v6, 16  ;;  %v381_v16 = vshll.u32 %v1666_v6, 16  ;;  %v387_v17 = vshll.u32 %v1674_v10, 16  ;;  %v1686_v18 = vld [vmem:[%s1660_s29 + $0x4] sm:$0x1]  ;;  %p1495_p3 = por %p1494_p2, %p1493_p1 }
  0x1c   : > { %v1692_v19 = vpack.c.b16 %v495_v9, %v494_v8  ;;  %v366_v20 = vrot.slane %v364_v11, 4  ;;  %v369_v21 = vrot.slane %v367_v12, 5  ;;  %v1695_v22 = vld [vmem:[%s1660_s29 + $0x8] sm:$0xf]  ;;  %v1698_v23 = vld [vmem:[%s1660_s29 + $0xc] sm:$0x1]  ;;  %v490_v43 = vunpack.c.l.b16 %v1679_v13  ;;  %p1491_p0 = pneg %p1490_p13 }
  0x1d   : > { %v375_v24 = vrot.slane %v373_v14, 5  ;;  %v380_v25 = vrot.slane %v378_v15, 4  ;;  %v383_v26 = vrot.slane %v381_v16, 5  ;;  %v389_v27 = vrot.slane %v387_v17, 5  ;;  %v1718_v48 = vld [vmem:[%s1660_s29 + $0x30] sm:$0xf] }
  0x1e   : > { %1303 = vmatmul.msk.bf16.vlgmr.msra.gmra.mxu3 %vm273_vm0, %v1692_v19  ;;  %v370_v28 = vor.u32 %v369_v21, %v366_v20  ;;  %v308_v29 = vshrl.u32 %v1679_v13, 16  ;;  %v311_v30 = vshll.u32 %v1679_v13, 16  ;;  %v317_v31 = vshll.u32 %v1686_v18, 16  ;;  %v1726_v53 = vld [vmem:[%s1660_s29 + $0x38] sm:$0xf]  ;;  %p1496_p5 = pnand %p1495_p3, %p1491_p0 }
  0x1f   : > { %v384_v33 = vor.u32 %v383_v26, %v380_v25  ;;  %v322_v34 = vshrl.u32 %v1695_v22, 16  ;;  %v325_v35 = vshll.u32 %v1695_v22, 16  ;;  %v331_v36 = vshll.u32 %v1698_v23, 16  ;;  %v1729_v54 = vld [vmem:[%s1660_s29 + $0x34] sm:$0x1] }
  0x20   : > { %v371_v37 = vrot.slane %v370_v28, 4  ;;  %v310_v38 = vrot.slane %v308_v29, 4  ;;  %v313_v39 = vrot.slane %v311_v30, 5  ;;  %v319_v46 = vrot.slane %v317_v31, 5  ;;  %v1752_v2 = vld [vmem:[%s1660_s29 + $0x3c] sm:$0x1] }
  0x21   : > { %v385_v40 = vrot.slane %v384_v33, 4  ;;  %v324_v41 = vrot.slane %v322_v34, 4  ;;  %v327_v42 = vrot.slane %v325_v35, 5  ;;  %v333_v47 = vrot.slane %v331_v36, 5  ;;  %v1756_v4 = vld [vmem:[%s1660_s29 + $0x10] sm:$0xf] }
  0x22   : > { %v376_v44 = vsel %vm1707_vm3, %v371_v37, %v375_v24  ;;  %v314_v45 = vor.u32 %v313_v39, %v310_v38  ;;  %v491_v52 = vunpack.c.l.b16 %v1695_v22  ;;  %v496_v57 = vunpack.c.l.b16 %v1718_v48  ;;  %v1762_v16 = vld [vmem:[%s1660_s29 + $0x14] sm:$0x1]  ;;  %v1775_v28 = vld [vmem:[%s1660_s29 + $0x18] sm:$0xf]  ;;  %v1781_v35 = vld [vmem:[%s1660_s29 + $0x1c] sm:$0x1] }
  0x23   : > { %v390_v49 = vsel %vm1707_vm3, %v385_v40, %v389_v27  ;;  %v1722_v50 = vunpack.c.l.b16 %v376_v44  ;;  %v328_v51 = vor.u32 %v327_v42, %v324_v41  ;;  %v497_v58 = vunpack.c.l.b16 %v1726_v53  ;;  %v1404_v25 = vld [vmem:[%s2090_s1 + $0x30] sm:$0xff]  ;;  %v1405_v44 = vld [vmem:[%s2090_s1 + $0x38] sm:$0xff] }
  0x24   : > { %v1731_v55 = vunpack.c.l.b16 %v390_v49  ;;  %v315_v56 = vrot.slane %v314_v45, 4  ;;  %v498_v60 = vpack.c.b16 %v491_v52, %v490_v43  ;;  %v392_v61 = vshrl.u32 %v1718_v48, 16  ;;  %v1403_v45 = vld [vmem:[%s2090_s1 + $0x28] sm:$0xff]  ;;  %958 = vmatpush.bf16.msra.mxu3 %v1405_v44 }
  0x25   : > { %v329_v59 = vrot.slane %v328_v51, 4  ;;  %v395_v62 = vshll.u32 %v1718_v48, 16  ;;  %v1749_v1 = vpack.c.b16 %v497_v58, %v496_v57  ;;  %v401_v3 = vshll.u32 %v1729_v54, 16  ;;  %841 = vmatpush.bf16.msrb.mxu1 %v1403_v45 }
  0x26   : > { %v1741_v63 = vpack.c.b16 %v1731_v55, %v1722_v50  ;;  %v320_v0 = vsel %vm1707_vm3, %v315_v56, %v319_v46  ;;  %1301 = vmatmul.msk.bf16.vlgmr.msra.gmra.mxu1 %vm273_vm0, %v498_v60  ;;  %v394_v14 = vrot.slane %v392_v61, 4  ;;  %v406_v21 = vshrl.u32 %v1726_v53, 16  ;;  %v1406_v61 = vld [vmem:[%s2090_s1 + $0x40] sm:$0xff] }
  0x27   : > { %v334_v11 = vsel %vm1707_vm3, %v329_v59, %v333_v47  ;;  %v422_v12 = vunpack.c.l.b16 %v320_v0  ;;  %v397_v15 = vrot.slane %v395_v62, 5  ;;  %v403_v20 = vrot.slane %v401_v3, 5 }
  0x28   : > { %1295 = vmatmul.msk.bf16.vlgmr.msra.gmra.mxu2 %vm273_vm0, %v1741_v63  ;;  %v1766_v17 = vunpack.c.l.b16 %v334_v11  ;;  %v409_v24 = vshll.u32 %v1726_v53, 16  ;;  %v415_v27 = vshll.u32 %v1752_v2, 16  ;;  %v336_v29 = vshrl.u32 %v1756_v4, 16 }
  0x29   : > { %v398_v26 = vor.u32 %v397_v15, %v394_v14  ;;  %v339_v30 = vshll.u32 %v1756_v4, 16  ;;  %v408_v33 = vrot.slane %v406_v21, 4  ;;  %v345_v36 = vshll.u32 %v1762_v16, 16  ;;  %893 = vmatpush.bf16.msra.mxu2 %v1404_v25 }
  0x2a   : > { %v430_v31 = vpack.c.b16 %v1766_v17, %v422_v12  ;;  %v411_v34 = vrot.slane %v409_v24, 5  ;;  %v338_v38 = vrot.slane %v336_v29, 4  ;;  %v417_v41 = vrot.slane %v415_v27, 5 }
  0x2b   : > { %v399_v37 = vrot.slane %v398_v26, 4  ;;  %v341_v39 = vrot.slane %v339_v30, 5  ;;  %v350_v42 = vshrl.u32 %v1775_v28, 16  ;;  %v353_v43 = vshll.u32 %v1775_v28, 16 }
  0x2c   : > { %1293 = vmatmul.msk.bf16.vlgmr.msra.gmra.mxu0 %vm273_vm0, %v430_v31  ;;  %v412_v40 = vor.u32 %v411_v34, %v408_v33  ;;  %v347_v49 = vrot.slane %v345_v36, 5  ;;  %v359_v51 = vshll.u32 %v1781_v35, 16  ;;  %v492_v0 = vunpack.c.l.b16 %v1756_v4 }
  0x2d   : > { %v404_v46 = vsel %vm1707_vm3, %v399_v37, %v403_v20  ;;  %v342_v47 = vor.u32 %v341_v39, %v338_v38  ;;  %v352_v59 = vrot.slane %v350_v42, 4  ;;  %v355_v60 = vrot.slane %v353_v43, 5  ;;  %1014 = vmatpush.bf16.msra.mxu0 %v1406_v61 }
  0x2e   : > { %1304 = vmatmul.msk.bf16.gmra.mxu3 %vm273_vm0, %v1749_v1  ;;  %v413_v56 = vrot.slane %v412_v40, 4  ;;  %v493_v3 = vunpack.c.l.b16 %v1775_v28  ;;  %v1805_v12 = vunpack.c.l.b16 %v404_v46  ;;  %v361_v15 = vrot.slane %v359_v51, 5 }
  0x2f   : > { %v343_v62 = vrot.slane %v342_v47, 4  ;;  %v356_v14 = vor.u32 %v355_v60, %v352_v59  ;;  %v570_v33 = vrot.slane %v1762_v16, 5  ;;  %v1307_v34 = vrot.slane %v1756_v4, 9 }
  0x30   : > { %v418_v11 = vsel %vm1707_vm3, %v413_v56, %v417_v41  ;;  %v1811_v25 = vpack.c.b16 %v493_v3, %v492_v0  ;;  %v562_v36 = vrot.slane %v1686_v18, 5  ;;  %v566_v37 = vrot.slane %v1698_v23, 5 }
  0x31   : > { %v1807_v20 = vunpack.c.l.b16 %v418_v11  ;;  %v348_v21 = vsel %vm1707_vm3, %v343_v62, %v347_v49  ;;  %v357_v24 = vrot.slane %v356_v14, 4  ;;  %v1305_v38 = vrot.slane %v1679_v13, 9  ;;  %v1883_v14 = vld [vmem:[%s1660_s29 + $0x40] sm:$0xf] }
  0x32   : > { %v424_v29 = vunpack.c.l.b16 %v348_v21  ;;  %v1306_v39 = vrot.slane %v1695_v22, 9  ;;  %v667_v40 = vpack.c.b16 %v492_v0, %v491_v52  ;;  %v571_v4 = vsel %vm1833_vm6, %v1307_v34, %v570_v33 }
  0x33   : > { %v1815_v26 = vpack.c.b16 %v1807_v20, %v1805_v12  ;;  %v362_v27 = vsel %vm1707_vm3, %v357_v24, %v361_v15  ;;  %v563_v18 = vsel %vm1833_vm6, %v1305_v38, %v562_v36  ;;  %v1310_v22 = vrot.slane %v1666_v6, 9 }
  0x34   : > { %v425_v30 = vunpack.c.l.b16 %v362_v27  ;;  %v567_v13 = vsel %vm1833_vm6, %v1306_v39, %v566_v37  ;;  %v582_v23 = vrot.slane %v1674_v10, 5  ;;  %v597_v52 = vunpack.c.l.b16 %v571_v4 }
  0x35   : > { %v595_v16 = vunpack.c.l.b16 %v563_v18  ;;  %v596_v42 = vunpack.c.l.b16 %v567_v13  ;;  %v744_v46 = vpack.c.b16 %v424_v29, %v1766_v17  ;;  %v1309_v47 = vrot.slane %v1663_v5, 9 }
  0x36   : > { %1302 = vmatmul.msk.bf16.gmra.mxu1 %vm273_vm0, %v1811_v25  ;;  %v1823_v31 = vpack.c.b16 %v425_v30, %v424_v29  ;;  %v583_v43 = vsel %vm1833_vm6, %v1310_v22, %v582_v23  ;;  %v578_v49 = vrot.slane %v1669_v7, 5  ;;  %v1308_v10 = vrot.slane %v1775_v28, 9  ;;  %v300_v22 = vld [vmem:[%s1660_s29 + $0x48] sm:$0xf] }
  0x37   : > { %v812_v44 = vpack.c.b16 %v597_v52, %v596_v42  ;;  %v603_v45 = vpack.c.b16 %v596_v42, %v595_v16  ;;  %v574_v51 = vrot.slane %v1781_v35, 5  ;;  %v668_v56 = vpack.c.b16 %v494_v8, %v493_v3 }
  0x38   : > { %1296 = vmatmul.msk.bf16.gmra.mxu2 %vm273_vm0, %v1815_v26  ;;  %v579_v59 = vsel %vm1833_vm6, %v1309_v47, %v578_v49  ;;  %v1312_v17 = vrot.slane %v1726_v53, 9  ;;  %v590_v7 = vrot.slane %v1752_v2, 5  ;;  %v745_v62 = vpack.c.b16 %v1722_v50, %v425_v30 }
  0x39   : > { %v575_v60 = vsel %vm1833_vm6, %v1308_v10, %v574_v51  ;;  %v599_v28 = vunpack.c.l.b16 %v579_v59  ;;  %v1311_v0 = vrot.slane %v1718_v48, 9  ;;  %v586_v3 = vrot.slane %v1729_v54, 5 }
  0x3a   : > { %v598_v35 = vunpack.c.l.b16 %v575_v60  ;;  %v591_v5 = vsel %vm1833_vm6, %v1312_v17, %v590_v7  ;;  %v669_v2 = vpack.c.b16 %v496_v57, %v495_v9  ;;  %v600_v15 = vunpack.c.l.b16 %v583_v43  ;;  %v299_v57 = vld [vmem:[%s1660_s29 + $0x44] sm:$0x1] }
  0x3b   : > { %v587_v11 = vsel %vm1833_vm6, %v1311_v0, %v586_v3  ;;  %v727_v21 = vshrl.u32 %v1883_v14, 16  ;;  %v730_v54 = vshll.u32 %v1883_v14, 16  ;;  %v666_v9 = vunpack.c.l.b16 %v1883_v14 }
  0x3c   : > { %1294 = vmatmul.msk.bf16.gmra.mxu0 %vm273_vm0, %v1823_v31  ;;  %v813_v8 = vpack.c.b16 %v599_v28, %v598_v35  ;;  %v604_v61 = vpack.c.b16 %v598_v35, %v597_v52  ;;  %v601_v50 = vunpack.c.l.b16 %v587_v11  ;;  %v605_v6 = vpack.c.b16 %v600_v15, %v599_v28 }
  0x3d   : > { %v729_v27 = vrot.slane %v727_v21, 4  ;;  %v732_v48 = vrot.slane %v730_v54, 5  ;;  %v746_v29 = vpack.c.b16 %v1805_v12, %v1731_v55  ;;  %v1343_v30 = vrot.slane %v1883_v14, 9 }
  0x3e   : > { %1329 = vmatmul.msk.bf16.vlgmr.msrb.gmra.mxu3 %vm273_vm0, %v667_v40  ;;  %v814_v24 = vpack.c.b16 %v601_v50, %v600_v15  ;;  %v806_v33 = vrot.slane %v299_v57, 5  ;;  %v736_v36 = vshll.u32 %v299_v57, 16  ;;  %v670_v37 = vpack.c.b16 %v666_v9, %v497_v58  ;;  %v1407_v15 = vld [vmem:[%s2092_s3] sm:$0xff] }
  0x3f   : > { %v733_v34 = vor.u32 %v732_v48, %v729_v27  ;;  %v602_v55 = vunpack.c.l.b16 %v591_v5  ;;  %v924_v23 = vshrl.u32 %v300_v22, 16  ;;  %v927_v52 = vshll.u32 %v300_v22, 16  ;;  %1134 = vmatpush.bf16.msra.mxu1 %v1407_v15 }
  0x40   : > { %v807_v38 = vsel %vm1833_vm6, %v1343_v30, %v806_v33  ;;  %v738_v40 = vrot.slane %v736_v36, 5  ;;  %v875_v59 = vunpack.c.l.b16 %v300_v22 }
  0x41   : > { %v734_v39 = vrot.slane %v733_v34, 4  ;;  %v811_v4 = vunpack.c.l.b16 %v807_v38  ;;  %v606_v13 = vpack.c.b16 %v602_v55, %v601_v50  ;;  %v926_v16 = vrot.slane %v924_v23, 4 }
  0x42   : > { %v929_v42 = vrot.slane %v927_v52, 5  ;;  %v876_v28 = vpack.c.b16 %v875_v59, %v666_v9 }
  0x43   : > { %v739_v12 = vsel %vm1707_vm3, %v734_v39, %v738_v40  ;;  %v815_v18 = vpack.c.b16 %v811_v4, %v602_v55  ;;  %v1552_v40 = vmov 0.0  }
  0x44   : > { %v743_v53 = vunpack.c.l.b16 %v739_v12  ;;  %v930_v43 = vor.u32 %v929_v42, %v926_v16  ;;  %274 = vst.msk [vmem:[#allocation2] sm:$0xff] %vm273_vm0, %v1552_v40 }
  0x45   : > { %275 = vst.msk [vmem:[#allocation2 + $0x8] sm:$0xff] %vm273_vm0, %v1552_v40 }
  0x46   : > { %1350 = vmatmul.msk.bf16.vlgmr.msrb.gmra.mxu1 %vm273_vm0, %v812_v44  ;;  %v747_v58 = vpack.c.b16 %v743_v53, %v1807_v20  ;;  %v301_v20 = vld [vmem:[%s1660_s29 + $0x4c] sm:$0x1]  ;;  %276 = vst.msk [vmem:[#allocation2 + $0x10] sm:$0xff] %vm273_vm0, %v1552_v40 }
  0x47   : > { %v933_v44 = vshll.u32 %v301_v20, 16  ;;  %277 = vst.msk [vmem:[#allocation2 + $0x18] sm:$0xff] %vm273_vm0, %v1552_v40 }
  0x48   : > { %1319 = vmatmul.msk.bf16.vlgmr.msrb.gmra.mxu2 %vm273_vm0, %v603_v45  ;;  %278 = vst.msk [vmem:[#allocation2 + $0x20] sm:$0xff] %vm273_vm0, %v1552_v40 }
  0x49   : > { %279 = vst.msk [vmem:[#allocation2 + $0x28] sm:$0xff] %vm273_vm0, %v1552_v40 }
  0x4a   : > { %280 = vst.msk [vmem:[#allocation2 + $0x30] sm:$0xff] %vm273_vm0, %v1552_v40 }
  0x4b   : > { %281 = vst.msk [vmem:[#allocation2 + $0x38] sm:$0xff] %vm273_vm0, %v1552_v40 }
  0x4c   : > { %1339 = vmatmul.msk.bf16.vlgmr.msrb.gmra.mxu0 %vm273_vm0, %v744_v46 }
  0x4e   : > { %1330 = vmatmul.msk.bf16.gmra.mxu3 %vm273_vm0, %v668_v56  ;;  %v991_v56 = vrot.slane %v301_v20, 5 }
  0x56   : > { %1351 = vmatmul.msk.bf16.gmra.mxu1 %vm273_vm0, %v813_v8 }
  0x58   : > { %1320 = vmatmul.msk.bf16.gmra.mxu2 %vm273_vm0, %v604_v61 }
  0x5c   : > { %1340 = vmatmul.msk.bf16.gmra.mxu0 %vm273_vm0, %v745_v62 }
  0x5e   : > { %1331 = vmatmul.msk.bf16.gmra.mxu3 %vm273_vm0, %v669_v2 }
  0x66   : > { %1352 = vmatmul.msk.bf16.gmra.mxu1 %vm273_vm0, %v814_v24 }
  0x68   : > { %1321 = vmatmul.msk.bf16.gmra.mxu2 %vm273_vm0, %v605_v6 }
  0x6c   : > { %1341 = vmatmul.msk.bf16.gmra.mxu0 %vm273_vm0, %v746_v29 }
  0x6e   : > { %1332 = vmatmul.msk.bf16.gmra.mxu3 %vm273_vm0, %v670_v37 }
  0x76   : > { %1353 = vmatmul.msk.bf16.gmra.mxu1 %vm273_vm0, %v815_v18 }
  0x78   : > { %1322 = vmatmul.msk.bf16.gmra.mxu2 %vm273_vm0, %v606_v13 }
  0x7c   : > { %1342 = vmatmul.msk.bf16.gmra.mxu0 %vm273_vm0, %v747_v58 }
  0x7e   : > { %1370 = vmatmul.msk.bf16.vlgmr.msra.gmra.mxu3 %vm273_vm0, %v1823_v31  ;;  %v935_v31 = vrot.slane %v933_v44, 5 }
  0x88   : > { %1360 = vmatmul.msk.bf16.vlgmr.msra.gmra.mxu2 %vm273_vm0, %v1811_v25  ;;  %v931_v25 = vrot.slane %v930_v43, 4 }
  0x8c   : > { %1381 = vmatmul.msk.bf16.vlgmr.msra.gmra.mxu0 %vm273_vm0, %v604_v61 }
  0x8e   : > { %1371 = vmatmul.msk.bf16.gmra.mxu3 %vm273_vm0, %v1741_v63  ;;  %v936_v63 = vsel %vm1707_vm3, %v931_v25, %v935_v31 }
  0x8f   : > { %v940_v46 = vunpack.c.l.b16 %v936_v63 }
  0x91   : > { %v941_v49 = vpack.c.b16 %v940_v46, %v743_v53 }
  0x98   : > { %1361 = vmatmul.msk.bf16.gmra.mxu2 %vm273_vm0, %v1692_v19 }
  0x9c   : > { %1382 = vmatmul.msk.bf16.gmra.mxu0 %vm273_vm0, %v605_v6 }
  0x9e   : > { %1372 = vmatmul.msk.bf16.gmra.mxu3 %vm273_vm0, %v1815_v26  ;;  %v1374_v26 = vrot.slane %v300_v22, 9 }
  0xa0   : > { %v992_v17 = vsel %vm1833_vm6, %v1374_v26, %v991_v56 }
  0xa1   : > { %v539_v45 = vpop.f32.mrf.mxu3  ;;  %v996_v35 = vunpack.c.l.b16 %v992_v17 }
  0xa3   : > { %v997_v5 = vpack.c.b16 %v996_v35, %v811_v4  ;;  %v529_v6 = vpop.f32.mrf.mxu1 }
  0xa8   : > { %1362 = vmatmul.msk.bf16.gmra.mxu2 %vm273_vm0, %v1749_v1 }
  0xa9   : > { %v1924_v47 = vpop.f32.mrf.mxu0  ;;  %v541_v19 = vpop.f32.mrf.mxu3 }
  0xaa   : > { %v530_v23 = vadd.f32 %v529_v6, %v1924_v47 }
  0xab   : > { %v472_v10 = vpop.f32.mrf.mxu2  ;;  %v531_v29 = vpop.f32.mrf.mxu1 }
  0xac   : > { %1383 = vmatmul.msk.bf16.gmra.mxu0 %vm273_vm0, %v606_v13  ;;  %v1927_v51 = vadd.f32 %v539_v45, %v472_v10 }
  0xae   : > { %1373 = vmatmul.msk.bf16.gmra.mxu3 %vm273_vm0, %v941_v49 }
  0xb1   : > { %v464_v32 = vpop.f32.mrf.mxu0  ;;  %v544_v60 = vpop.f32.mrf.mxu3 }
  0xb2   : > { %v532_v25 = vadd.f32 %v531_v29, %v464_v32 }
  0xb3   : > { %v474_v1 = vpop.f32.mrf.mxu2  ;;  %v534_v36 = vpop.f32.mrf.mxu1 }
  0xb4   : > { %v1932_v7 = vadd.f32 %v541_v19, %v474_v1  ;;  %v1044_v1 = vld [vmem:[#allocation2] sm:$0xff] }
  0xb8   : > { %1363 = vmatmul.msk.bf16.gmra.mxu2 %vm273_vm0, %v876_v28 }
  0xb9   : > { %v467_v8 = vpop.f32.mrf.mxu0  ;;  %v546_v61 = vpop.f32.mrf.mxu3 }
  0xba   : > { %v535_v26 = vadd.f32 %v534_v36, %v467_v8 }
  0xbb   : > { %v477_v62 = vpop.f32.mrf.mxu2  ;;  %v536_v4 = vpop.f32.mrf.mxu1 }
  0xbc   : > { %1384 = vmatmul.msk.bf16.gmra.mxu0 %vm273_vm0, %v997_v5  ;;  %v1936_v0 = vadd.f32 %v544_v60, %v477_v62 }
  0xc1   : > { %v1938_v3 = vpop.f32.mrf.mxu0  ;;  %v698_v2 = vpop.f32.mrf.mxu3 }
  0xc3   : > { %v479_v41 = vpop.f32.mrf.mxu2  ;;  %v843_v13 = vpop.f32.mrf.mxu1 }
  0xc4   : > { %v1940_v11 = vadd.f32 %v546_v61, %v479_v41  ;;  %v537_v41 = vadd.f32 %v536_v4, %v1938_v3 }
  0xc9   : > { %v775_v14 = vpop.f32.mrf.mxu0  ;;  %v700_v50 = vpop.f32.mrf.mxu3 }
  0xcb   : > { %v634_v21 = vpop.f32.mrf.mxu2  ;;  %v845_v43 = vpop.f32.mrf.mxu1 }
  0xcc   : > { %v654_v52 = vadd.f32 %v634_v21, %v530_v23  ;;  %v1046_v23 = vld [vmem:[#allocation2 + $0x10] sm:$0xff] }
  0xce   : > { %v718_v20 = vadd.f32 %v698_v2, %v654_v52 }
  0xd0   : > { %v795_v31 = vadd.f32 %v775_v14, %v718_v20 }
  0xd1   : > { %v777_v54 = vpop.f32.mrf.mxu0  ;;  %v703_v24 = vpop.f32.mrf.mxu3 }
  0xd2   : > { %v863_v19 = vadd.f32 %v843_v13, %v795_v31  ;;  %v1992_v13 = vld [vmem:[%s2091_s2] ss:$0 sm:$0xff] }
  0xd3   : > { %v636_v27 = vpop.f32.mrf.mxu2  ;;  %v848_v59 = vpop.f32.mrf.mxu1 }
  0xd4   : > { %v655_v45 = vadd.f32 %v636_v27, %v532_v25 }
  0xd6   : > { %v719_v49 = vadd.f32 %v700_v50, %v655_v45 }
  0xd8   : > { %v796_v47 = vadd.f32 %v777_v54, %v719_v49  ;;  %v1045_v54 = vld [vmem:[#allocation2 + $0x8] sm:$0xff] }
  0xd9   : > { %v780_v48 = vpop.f32.mrf.mxu0  ;;  %v1945_v9 = vpop.f32.mrf.mxu3 }
  0xda   : > { %v864_v5 = vadd.f32 %v845_v43, %v796_v47 }
  0xdb   : > { %v639_v57 = vpop.f32.mrf.mxu2  ;;  %v850_v21 = vpop.f32.mrf.mxu1 }
  0xdc   : > { %v656_v60 = vadd.f32 %v639_v57, %v535_v26  ;;  %v1047_v26 = vld [vmem:[#allocation2 + $0x18] sm:$0xff] }
  0xde   : > { %v720_v61 = vadd.f32 %v703_v24, %v656_v60 }
  0xe0   : > { %v797_v50 = vadd.f32 %v780_v48, %v720_v61 }
  0xe1   : > { %v1947_v30 = vpop.f32.mrf.mxu0  ;;  %v1949_v33 = vpop.f32.mrf.mxu3 }
  0xe2   : > { %v865_v57 = vadd.f32 %v848_v59, %v797_v50 }
  0xe3   : > { %v641_v34 = vpop.f32.mrf.mxu2  ;;  %v853_v20 = vpop.f32.mrf.mxu1 }
  0xe4   : > { %v657_v8 = vadd.f32 %v641_v34, %v537_v41 }
  0xe6   : > { %v721_v29 = vadd.f32 %v1945_v9, %v657_v8 }
  0xe8   : > { %v798_v48 = vadd.f32 %v1947_v30, %v721_v29 }
  0xe9   : > { %v1951_v37 = vpop.f32.mrf.mxu0  ;;  %v1953_v38 = vpop.f32.mrf.mxu3 }
  0xea   : > { %v866_v25 = vadd.f32 %v850_v21, %v798_v48 }
  0xeb   : > { %v1955_v39 = vpop.f32.mrf.mxu2 }
  0xec   : > { %v658_v3 = vadd.f32 %v1955_v39, %v1927_v51 }
  0xf1   : > { %v1963_v55 = vpop.f32.mrf.mxu0  ;;  %v1965_v12 = vpop.f32.mrf.mxu3 }
  0xf3   : > { %v1969_v18 = vpop.f32.mrf.mxu2 }
  0xf9   : > { %v1971_v53 = vpop.f32.mrf.mxu0  ;;  %v1973_v58 = vpop.f32.mrf.mxu3 }
  0xfb   : > { %v1975_v22 = vpop.f32.mrf.mxu2 }
 0x101   : > { %v1978_v16 = vpop.f32.mrf.mxu0  ;;  %v960_v42 = vpop.f32.mrf.mxu3 }
 0x103   : > { %v1980_v44 = vpop.f32.mrf.mxu2 }
 0x109   : > { %v1016_v63 = vpop.f32.mrf.mxu0  ;;  %v962_v46 = vpop.f32.mrf.mxu3 }
 0x10b   : > { %v895_v10 = vpop.f32.mrf.mxu2 }
 0x10c   : > { %v915_v56 = vadd.f32 %v895_v10, %v863_v19  ;;  %v659_v19 = vadd.f32 %v1969_v18, %v1932_v7  ;;  %v660_v7 = vadd.f32 %v1975_v22, %v1936_v0 }
 0x10e   : > { %v980_v17 = vadd.f32 %v960_v42, %v915_v56  ;;  %v722_v42 = vadd.f32 %v1949_v33, %v658_v3  ;;  %v724_v41 = vadd.f32 %v1965_v12, %v660_v7 }
 0x110   : > { %v1036_v28 = vadd.f32 %v1016_v63, %v980_v17 }
 0x111   : > { %v1018_v35 = vpop.f32.mrf.mxu0  ;;  %v965_v2 = vpop.f32.mrf.mxu3 }
 0x112   : > { %v1052_v62 = vadd.f32 %v1044_v1, %v1036_v28  ;;  %v723_v1 = vadd.f32 %v1953_v38, %v659_v19 }
 0x113   : > { %v897_v32 = vpop.f32.mrf.mxu2 }
 0x114   : > { %1060 = vst.msk [vmem:[#allocation2] sm:$0xff] %vm273_vm0, %v1052_v62  ;;  %v916_v14 = vadd.f32 %v897_v32, %v864_v5  ;;  %v800_v18 = vadd.f32 %v1963_v55, %v723_v1  ;;  %v1048_v62 = vld [vmem:[#allocation2 + $0x20] sm:$0xff]  ;;  %v801_v55 = vadd.f32 %v1971_v53, %v724_v41 }
 0x116   : > { %v981_v15 = vadd.f32 %v962_v46, %v916_v14  ;;  %v799_v46 = vadd.f32 %v1951_v37, %v722_v42  ;;  %v1050_v42 = vld [vmem:[#allocation2 + $0x30] sm:$0xff] }
 0x118   : > { %v1037_v6 = vadd.f32 %v1018_v35, %v981_v15  ;;  %v867_v17 = vadd.f32 %v853_v20, %v799_v46  ;;  %v855_v35 = vpop.f32.mrf.mxu1 }
 0x119   : > { %v1021_v27 = vpop.f32.mrf.mxu0  ;;  %v967_v4 = vpop.f32.mrf.mxu3  ;;  %v868_v14 = vadd.f32 %v855_v35, %v800_v18 }
 0x11a   : > { %v1053_v36 = vadd.f32 %v1045_v54, %v1037_v6 }
 0x11b   : > { %v900_v24 = vpop.f32.mrf.mxu2  ;;  %v1071_v52 = vld [vmem:[#allocation2] sm:$0xff] }
 0x11c   : > { %1061 = vst.msk [vmem:[#allocation2 + $0x8] sm:$0xff] %vm273_vm0, %v1053_v36  ;;  %v917_v40 = vadd.f32 %v900_v24, %v865_v57  ;;  %v1083_v51 = vadd.f32 %v1992_v13, %v1071_v52  ;;  %v1049_v36 = vld [vmem:[#allocation2 + $0x28] sm:$0xff] }
 0x11e   : > { %v982_v34 = vadd.f32 %v965_v2, %v917_v40  ;;  %v1091_v33 = vmax.f32 %v1083_v51, 0.0 }
 0x120   : > { %v1038_v9 = vadd.f32 %v1021_v27, %v982_v34  ;;  %v858_v22 = vpop.f32.mrf.mxu1  ;;  %v661_v27 = vadd.f32 %v1980_v44, %v1940_v11 }
 0x121   : > { %v1023_v43 = vpop.f32.mrf.mxu0  ;;  %v970_v56 = vpop.f32.mrf.mxu3  ;;  %v869_v3 = vadd.f32 %v858_v22, %v801_v55 }
 0x122   : > { %v1054_v31 = vadd.f32 %v1046_v23, %v1038_v9 }
 0x123   : > { %v902_v39 = vpop.f32.mrf.mxu2  ;;  %v1072_v45 = vld [vmem:[#allocation2 + $0x8] sm:$0xff] }
 0x124   : > { %1062 = vst.msk [vmem:[#allocation2 + $0x10] sm:$0xff] %vm273_vm0, %v1054_v31  ;;  %v918_v30 = vadd.f32 %v902_v39, %v866_v25  ;;  %v1084_v63 = vadd.f32 %v1992_v13, %v1072_v45 }
 0x126   : > { %v983_v49 = vadd.f32 %v967_v4, %v918_v30  ;;  %v1092_v10 = vmax.f32 %v1084_v63, 0.0  ;;  %v725_v4 = vadd.f32 %v1973_v58, %v661_v27 }
 0x128   : > { %v1039_v59 = vadd.f32 %v1023_v43, %v983_v49  ;;  %v1099_v47 = vpack.c.bf16 %v1092_v10, %v1091_v33  ;;  %v802_v11 = vadd.f32 %v1978_v16, %v725_v4  ;;  %v860_v9 = vpop.f32.mrf.mxu1  ;;  %v1051_v33 = vld [vmem:[#allocation2 + $0x38] sm:$0xff] }
 0x129   : > { %v1026_v60 = vpop.f32.mrf.mxu0  ;;  %v972_v38 = vpop.f32.mrf.mxu3 }
 0x12a   : > { %v1055_v28 = vadd.f32 %v1047_v26, %v1039_v59  ;;  %1389 = vmatmul.msk.bf16.vlgmr.msra.gmra.mxu1 %vm273_vm0, %v1099_v47  ;;  %v870_v25 = vadd.f32 %v860_v9, %v802_v11 }
 0x12b   : > { %v905_v5 = vpop.f32.mrf.mxu2  ;;  %v1073_v32 = vld [vmem:[#allocation2 + $0x10] sm:$0xff] }
 0x12c   : > { %1063 = vst.msk [vmem:[#allocation2 + $0x18] sm:$0xff] %vm273_vm0, %v1055_v28  ;;  %v919_v37 = vadd.f32 %v905_v5, %v867_v17  ;;  %v1085_v8 = vadd.f32 %v1992_v13, %v1073_v32  ;;  %v1471_v5 = vld [vmem:[%s2093_s4] ss:$0 sm:$0xff] }
 0x12e   : > { %v984_v61 = vadd.f32 %v970_v56, %v919_v37  ;;  %v1093_v57 = vmax.f32 %v1085_v8, 0.0 }
 0x130   : > { %v1040_v2 = vadd.f32 %v1026_v60, %v984_v61 }
 0x131   : > { %v1028_v15 = vpop.f32.mrf.mxu0  ;;  %v975_v34 = vpop.f32.mrf.mxu3 }
 0x132   : > { %v1056_v50 = vadd.f32 %v1048_v62, %v1040_v2 }
 0x133   : > { %v907_v21 = vpop.f32.mrf.mxu2  ;;  %v1074_v54 = vld [vmem:[#allocation2 + $0x18] sm:$0xff] }
 0x134   : > { %1064 = vst.msk [vmem:[#allocation2 + $0x20] sm:$0xff] %vm273_vm0, %v1056_v50  ;;  %v920_v6 = vadd.f32 %v907_v21, %v868_v14  ;;  %v1086_v0 = vadd.f32 %v1992_v13, %v1074_v54 }
 0x136   : > { %v985_v12 = vadd.f32 %v972_v38, %v920_v6  ;;  %v1094_v29 = vmax.f32 %v1086_v0, 0.0 }
 0x138   : > { %v1041_v24 = vadd.f32 %v1028_v15, %v985_v12  ;;  %v1100_v40 = vpack.c.bf16 %v1094_v29, %v1093_v57 }
 0x139   : > { %v1031_v52 = vpop.f32.mrf.mxu0  ;;  %v977_v63 = vpop.f32.mrf.mxu3 }
 0x13a   : > { %v1057_v48 = vadd.f32 %v1049_v36, %v1041_v24  ;;  %1390 = vmatmul.msk.bf16.gmra.mxu1 %vm273_vm0, %v1100_v40 }
 0x13b   : > { %v910_v23 = vpop.f32.mrf.mxu2  ;;  %v1075_v20 = vld [vmem:[#allocation2 + $0x20] sm:$0xff] }
 0x13c   : > { %1065 = vst.msk [vmem:[#allocation2 + $0x28] sm:$0xff] %vm273_vm0, %v1057_v48  ;;  %v921_v53 = vadd.f32 %v910_v23, %v869_v3  ;;  %v1087_v58 = vadd.f32 %v1992_v13, %v1075_v20 }
 0x13e   : > { %v986_v44 = vadd.f32 %v975_v34, %v921_v53  ;;  %v1095_v19 = vmax.f32 %v1087_v58, 0.0 }
 0x140   : > { %v1042_v43 = vadd.f32 %v1031_v52, %v986_v44 }
 0x141   : > { %v1033_v49 = vpop.f32.mrf.mxu0 }
 0x142   : > { %v1058_v31 = vadd.f32 %v1050_v42, %v1042_v43 }
 0x143   : > { %v912_v51 = vpop.f32.mrf.mxu2  ;;  %v1076_v39 = vld [vmem:[#allocation2 + $0x28] sm:$0xff] }
 0x144   : > { %1066 = vst.msk [vmem:[#allocation2 + $0x30] sm:$0xff] %vm273_vm0, %v1058_v31  ;;  %v922_v45 = vadd.f32 %v912_v51, %v870_v25  ;;  %v1088_v30 = vadd.f32 %v1992_v13, %v1076_v39 }
 0x146   : > { %v987_v46 = vadd.f32 %v977_v63, %v922_v45  ;;  %v1096_v16 = vmax.f32 %v1088_v30, 0.0 }
 0x148   : > { %v1043_v10 = vadd.f32 %v1033_v49, %v987_v46  ;;  %v1101_v26 = vpack.c.bf16 %v1096_v16, %v1095_v19 }
 0x14a   : > { %v1059_v56 = vadd.f32 %v1051_v33, %v1043_v10  ;;  %1391 = vmatmul.msk.bf16.gmra.mxu1 %vm273_vm0, %v1101_v26 }
 0x14b   : > { %v1077_v59 = vld [vmem:[#allocation2 + $0x30] sm:$0xff] }
 0x14c   : > { %1067 = vst.msk [vmem:[#allocation2 + $0x38] sm:$0xff] %vm273_vm0, %v1059_v56  ;;  %v1089_v47 = vadd.f32 %v1992_v13, %v1077_v59 }
 0x14e   : > { %v1097_v1 = vmax.f32 %v1089_v47, 0.0 }
 0x153   : > { %v1078_v60 = vld [vmem:[#allocation2 + $0x38] sm:$0xff] }
 0x154   : > { %v1090_v17 = vadd.f32 %v1992_v13, %v1078_v60 }
 0x156   : > { %v1098_v28 = vmax.f32 %v1090_v17, 0.0 }
 0x158   : > { %v1102_v35 = vpack.c.bf16 %v1098_v28, %v1097_v1 }
 0x15a   : > { %1392 = vmatmul.msk.bf16.gmra.mxu1 %vm273_vm0, %v1102_v35 }
 0x1a7   : > { %v1136_v37 = vpop.f32.mrf.mxu1 }
 0x1a8   : > { %v1137_v7 = vadd.f32 %v1471_v5, %v1136_v37 }
 0x1aa   : > { %v1156_v18 = vmax.f32 %v1137_v7, 0.0 }
 0x1ac   : > { %1164 = vst.msk [vmem:[%s2032_s8] sm:$0xff] %vm273_vm0, %v1156_v18 }
 0x1af   : > { %v1138_v13 = vpop.f32.mrf.mxu1 }
 0x1b0   : > { %v1139_v61 = vadd.f32 %v1471_v5, %v1138_v13 }
 0x1b2   : > { %v1157_v62 = vmax.f32 %v1139_v61, 0.0 }
 0x1b4   : > { %1165 = vst.msk [vmem:[%s2032_s8 + $0x8] sm:$0xff] %vm273_vm0, %v1157_v62 }
 0x1b7   : > { %v1141_v32 = vpop.f32.mrf.mxu1 }
 0x1b8   : > { %v1142_v2 = vadd.f32 %v1471_v5, %v1141_v32 }
 0x1ba   : > { %v1158_v41 = vmax.f32 %v1142_v2, 0.0 }
 0x1bc   : > { %1166 = vst.msk [vmem:[%s2032_s8 + $0x10] sm:$0xff] %vm273_vm0, %v1158_v41 }
 0x1bf   : > { %v1143_v38 = vpop.f32.mrf.mxu1 }
 0x1c0   : > { %v1144_v14 = vadd.f32 %v1471_v5, %v1143_v38 }
 0x1c2   : > { %v1159_v50 = vmax.f32 %v1144_v14, 0.0 }
 0x1c4   : > { %1167 = vst.msk [vmem:[%s2032_s8 + $0x18] sm:$0xff] %vm273_vm0, %v1159_v50 }
 0x1c7   : > { %v1146_v8 = vpop.f32.mrf.mxu1 }
 0x1c8   : > { %v1147_v15 = vadd.f32 %v1471_v5, %v1146_v8 }
 0x1ca   : > { %v1160_v21 = vmax.f32 %v1147_v15, 0.0 }
 0x1cc   : > { %1168 = vst.msk [vmem:[%s2032_s8 + $0x20] sm:$0xff] %vm273_vm0, %v1160_v21 }
 0x1cf   : > { %v1148_v54 = vpop.f32.mrf.mxu1 }
 0x1d0   : > { %v1149_v6 = vadd.f32 %v1471_v5, %v1148_v54 }
 0x1d2   : > { %v1161_v0 = vmax.f32 %v1149_v6, 0.0 }
 0x1d4   : > { %1169 = vst.msk [vmem:[%s2032_s8 + $0x28] sm:$0xff] %vm273_vm0, %v1161_v0 }
 0x1d7   : > { %v1151_v55 = vpop.f32.mrf.mxu1 }
 0x1d8   : > { %v1152_v22 = vadd.f32 %v1471_v5, %v1151_v55 }
 0x1da   : > { %v1162_v27 = vmax.f32 %v1152_v22, 0.0 }
 0x1dc   : > { %1170 = vst.msk [vmem:[%s2032_s8 + $0x30] sm:$0xff] %vm273_vm0, %v1162_v27 }
 0x1df   : > { %v1153_v12 = vpop.f32.mrf.mxu1 }
 0x1e0   : > { %v1154_v57 = vadd.f32 %v1471_v5, %v1153_v12 }
 0x1e2   : > { %v1163_v29 = vmax.f32 %v1154_v57, 0.0 }
 0x1e4   : > { %1171 = vst.msk [vmem:[%s2032_s8 + $0x38] sm:$0xff] %vm273_vm0, %v1163_v29 }
 0x1e5   : > { %1499 = shalt.err (!%p1496_p5)
}
 0x1e6   : > { %s1553_s25 = smov 128   ;;  %s1554_s8 = smov 8  }
 0x1e7   : > { %1412 = dma.vmem_to_hbm [thread:$0]  (%p1625_p4), %s1186_s13, 1024, %s1188_s14, %s1173_s15, %s1553_s25, %s1553_s25, %s1554_s8  }
 0x1e8 PF: > { %p1418_p6 = scmp.ge.s32.totalorder %s1550_s23, 2  ;;  %s1202_s9 = sand.u32 1, %s1530_s18  }
 0x1e9   : > { %s1203_s10 = scalar_lea.sflag [#allocation4], %s1202_s9 }
 0x1ea   : > { %p1415_p7 = pnand %p1418_p6, %p1632_p8 }
 0x1ec   : > { %p1416_p9 = pneg %p1415_p7 }
 0x1ee   : > { %1525 = dma.done.wait (%p1416_p9), %s1203_s10, 1024  }
 0x1ef   : > { %1527 = vsyncadd (%p1416_p9), %s1203_s10, 4294966272  ;;  %s18_s23 = sadd.s32 1, %s1550_s23   ;;  %s2101_s18 = smov %s1534_s19 }
 0x1f0   : > { %p15_p10 = scmp.ge.s32.totalorder %s18_s23, 4   ;;  %s2102_s19 = smov %s1538_s20 }
 0x1f1   : > { %s2103_s20 = smov %s1638_s6  ;;  %s2104_s21 = smov %s1546_s22 }
 0x1f2   : > { %s2105_s22 = smov %s2107_s26  ;;  %17 = sbr.rel (!%p15_p10) target bundleno = 4 (0x4), region = 94 }
 0x1f7   :  { %1209 = vsyncpa [#allocation4], 1 }
 0x1f8   :  { %1211 = vsyncpa [#allocation4 + $0x1], 1 }

// kernel: decouple_layer_forward.3
= control target key start
LH: loop header
LB: loop body
LE: loop exit
PB: predicated region body
PF: predicated region fallthrough
CT: control target
= control target key end

     0   :  { %s1552_s12 = smov 0   ;;  %s1554_s13 = smov 0   ;;  %s2017_s0 = inlined_call_operand.vmem [shape: bf16[2,10,10,32], index: 0, kind: input, shape index: {}]   ;;  %s2018_s1 = inlined_call_operand.vmem [shape: bf16[9,32,32], index: 1, kind: input, shape index: {}]   ;;  %s2019_s2 = inlined_call_operand.vmem [shape: f32[1,32], index: 2, kind: input, shape index: {}]   ;;  %s2020_s3 = inlined_call_operand.vmem [shape: bf16[2,8,8,32], index: 3, kind: output, shape index: {}]  }
   0x1   :  { %s1556_s14 = smov 0  }
   0x2 LB: > { %s32_s15 = sadd.s32 1, %s1525_s13  ;;  %p1299_p0 = scmp.ge.s32.totalorder %s1529_s14, 1  ;;  %s1529_s14 = sphi %s1556_s14, %s13_s14   ;;  %s1525_s13 = sphi %s1554_s13, %s2026_s13   ;;  %s1521_s12 = sphi %s1552_s12, %s2025_s12  }
   0x3   : > { %p34_p1 = scmp.ge.s32.totalorder %s32_s15, 2  ;;  %p187_p2 = scmp.lt.s32.totalorder %s1529_s14, 3 }
   0x5   : > { %s2028_s15 = smov (%p34_p1, %s32_s15), 0  ;;  %p188_p3 = pnand %p1299_p0, %p187_p2 }
   0x6   : > { %p228_p4 = scmp.lt.s32.totalorder (!%p188_p3), %s1521_s12, 1 }
   0x7   : > { %191 = sbr.rel (%p188_p3) target bundleno = 330 (0x14a), region = 32 }
   0xc   : > { %v1459_v0 = vld [vmem:[%s2018_s1 + $0x18] sm:$0xff]  ;;  %v1458_v1 = vld [vmem:[%s2018_s1 + $0x10] sm:$0xff]  ;;  %s2030_s12 = smov (!%p228_p4, %s1521_s12), 1  ;;  %v1461_v2 = vld [vmem:[%s2018_s1 + $0x28] sm:$0xff]  ;;  %vm294_vm0 = vsmask.f32 3328 }
   0xd   : > { %1474 = vmatpush.bf16.msra.mxu1 %v1459_v0  ;;  %1475 = vmatpush.bf16.msra.mxu2 %v1459_v0  ;;  %s1480_s20 = smul.u32 80, %s2030_s12  ;;  %v1463_v3 = vld [vmem:[%s2018_s1 + $0x38] sm:$0xff]  ;;  %v1457_v4 = vld [vmem:[%s2018_s1 + $0x8] sm:$0xff]  ;;  %vm295_vm1 = vsmask.f32 7440  ;;  %v1460_v6 = vld [vmem:[%s2018_s1 + $0x20] sm:$0xff] }
   0xe   : > { %1476 = vmatpush.bf16.msra.mxu3 %v1459_v0  ;;  %457 = vmatpush.bf16.msra.mxu0 %v1459_v0  ;;  %v1465_v5 = vld [vmem:[%s2018_s1 + $0x48] sm:$0xff]  ;;  %v1462_v7 = vld [vmem:[%s2018_s1 + $0x30] sm:$0xff]  ;;  %v1456_v11 = vld [vmem:[%s2018_s1] sm:$0xff]  ;;  %vm261_vm2 = vcmask 261120   ;;  %vm561_vm4 = vcmask 1042432   ;;  %vm562_vm5 = vcmask 1046532  }
   0xf   : > { %s1594_s4 = scalar_lea.vmem %s2017_s0, %s1480_s20  ;;  %v1464_v12 = vld [vmem:[%s2018_s1 + $0x40] sm:$0xff]  ;;  %vm1648_vm3 = vmor %vm294_vm0, %vm295_vm1  ;;  %s1455_s8 = sshll.u32 %s2030_s12, 5  ;;  %vm1167_vm7 = vcmask 257024  }
  0x10   : > { %v1603_v8 = vld [vmem:[%s1594_s4 + $0x10] sm:$0xf]  ;;  %v1606_v9 = vld [vmem:[%s1594_s4 + $0x14] sm:$0x1]  ;;  %v1609_v10 = vld [vmem:[%s1594_s4 + $0x18] sm:$0xf]  ;;  %s1960_s11 = scalar_lea.vmem %s2020_s3, %s1455_s8 }
  0x11   : > { %1477 = vmatpush.bf16.msra.mxu1 %v1458_v1  ;;  %1478 = vmatpush.bf16.msra.mxu2 %v1458_v1  ;;  %v1618_v13 = vld [vmem:[%s1594_s4 + $0x1c] sm:$0x1]  ;;  %v326_v14 = vshrl.u32 %v1603_v8, 16  ;;  %v329_v15 = vshll.u32 %v1603_v8, 16  ;;  %v335_v16 = vshll.u32 %v1606_v9, 16  ;;  %v340_v17 = vshrl.u32 %v1609_v10, 16  ;;  %vm1721_vm6 = vmor %vm561_vm4, %vm562_vm5 }
  0x12   : > { %1479 = vmatpush.bf16.msra.mxu3 %v1458_v1  ;;  %458 = vmatpush.bf16.msra.mxu0 %v1458_v1  ;;  %v343_v18 = vshll.u32 %v1609_v10, 16  ;;  %v349_v19 = vshll.u32 %v1618_v13, 16  ;;  %v1627_v20 = vld [vmem:[%s1594_s4 + $0x20] sm:$0xf]  ;;  %v1630_v21 = vld [vmem:[%s1594_s4 + $0x24] sm:$0x1] }
  0x13   : > { %v328_v22 = vrot.slane %v326_v14, 4  ;;  %v331_v23 = vrot.slane %v329_v15, 5  ;;  %v337_v24 = vrot.slane %v335_v16, 5  ;;  %v342_v25 = vrot.slane %v340_v17, 4  ;;  %v1633_v26 = vld [vmem:[%s1594_s4 + $0x28] sm:$0xf] }
  0x14   : > { %v345_v27 = vrot.slane %v343_v18, 5  ;;  %v351_v28 = vrot.slane %v349_v19, 5  ;;  %v1636_v29 = vld [vmem:[%s1594_s4 + $0x2c] sm:$0x1]  ;;  %v354_v30 = vshrl.u32 %v1627_v20, 16  ;;  %v357_v31 = vshll.u32 %v1627_v20, 16 }
  0x15   : > { %643 = vmatpush.bf16.msrb.mxu2 %v1461_v2  ;;  %530 = vmatpush.bf16.msrb.mxu1 %v1457_v4  ;;  %v332_v32 = vor.u32 %v331_v23, %v328_v22  ;;  %v363_v33 = vshll.u32 %v1630_v21, 16  ;;  %v368_v34 = vshrl.u32 %v1633_v26, 16  ;;  %v371_v35 = vshll.u32 %v1633_v26, 16  ;;  %v1644_v36 = vld [vmem:[%s1594_s4 + $0x30] sm:$0xf]  ;;  %v1467_v16 = vld [vmem:[%s2018_s1 + $0x58] sm:$0xff] }
  0x16   : > { %715 = vmatpush.bf16.msrb.mxu3 %v1463_v3  ;;  %800 = vmatpush.bf16.msrb.mxu0 %v1465_v5  ;;  %v346_v38 = vor.u32 %v345_v27, %v342_v25  ;;  %v356_v39 = vrot.slane %v354_v30, 4  ;;  %v359_v40 = vrot.slane %v357_v31, 5  ;;  %v377_v41 = vshll.u32 %v1636_v29, 16  ;;  %v1654_v42 = vld [vmem:[%s1594_s4 + $0x34] sm:$0x1] }
  0x17   : > { %v333_v43 = vrot.slane %v332_v32, 4  ;;  %v365_v44 = vrot.slane %v363_v33, 5  ;;  %v370_v45 = vrot.slane %v368_v34, 4  ;;  %v373_v46 = vrot.slane %v371_v35, 5  ;;  %v1660_v53 = vld [vmem:[%s1594_s4 + $0x38] sm:$0xf] }
  0x18   : > { %v347_v47 = vrot.slane %v346_v38, 4  ;;  %v360_v48 = vor.u32 %v359_v40, %v356_v39  ;;  %v379_v49 = vrot.slane %v377_v41, 5  ;;  %v382_v50 = vshrl.u32 %v1644_v36, 16  ;;  %v1663_v54 = vld [vmem:[%s1594_s4 + $0x3c] sm:$0x1] }
  0x19   : > { %644 = vmatpush.bf16.msrb.mxu2 %v1460_v6  ;;  %531 = vmatpush.bf16.msrb.mxu1 %v1456_v11  ;;  %v338_v51 = vsel %vm1648_vm3, %v333_v43, %v337_v24  ;;  %v374_v52 = vor.u32 %v373_v46, %v370_v45  ;;  %v385_v55 = vshll.u32 %v1644_v36, 16  ;;  %v391_v56 = vshll.u32 %v1654_v42, 16  ;;  %v1674_v1 = vld [vmem:[%s1594_s4] sm:$0xf]  ;;  %v271_v6 = vld [vmem:[%s1594_s4 + $0x4] sm:$0x1] }
  0x1a   : > { %716 = vmatpush.bf16.msrb.mxu3 %v1462_v7  ;;  %801 = vmatpush.bf16.msrb.mxu0 %v1464_v12  ;;  %v352_v57 = vsel %vm1648_vm3, %v347_v47, %v351_v28  ;;  %v1669_v58 = vunpack.c.l.b16 %v338_v51  ;;  %v361_v59 = vrot.slane %v360_v48, 4  ;;  %v384_v60 = vrot.slane %v382_v50, 4  ;;  %v1691_v15 = vld [vmem:[%s1594_s4 + $0x8] sm:$0xf]  ;;  %v273_v32 = vld [vmem:[%s1594_s4 + $0xc] sm:$0x1] }
  0x1b   : > { %v1671_v61 = vunpack.c.l.b16 %v352_v57  ;;  %v375_v62 = vrot.slane %v374_v52, 4  ;;  %v387_v63 = vrot.slane %v385_v55, 5  ;;  %v393_v0 = vrot.slane %v391_v56, 5  ;;  %v1469_v28 = vld [vmem:[%s2018_s1 + $0x68] sm:$0xff] }
  0x1c   : > { %v366_v2 = vsel %vm1648_vm3, %v361_v59, %v365_v44  ;;  %v396_v3 = vshrl.u32 %v1660_v53, 16  ;;  %v399_v4 = vshll.u32 %v1660_v53, 16  ;;  %v405_v5 = vshll.u32 %v1663_v54, 16 }
  0x1d   : > { %v1684_v7 = vpack.c.b16 %v1671_v61, %v1669_v58  ;;  %v380_v11 = vsel %vm1648_vm3, %v375_v62, %v379_v49  ;;  %v1688_v12 = vunpack.c.l.b16 %v366_v2  ;;  %v388_v14 = vor.u32 %v387_v63, %v384_v60 }
  0x1e   : > { %v1696_v17 = vunpack.c.l.b16 %v380_v11  ;;  %v398_v18 = vrot.slane %v396_v3, 4  ;;  %v401_v19 = vrot.slane %v399_v4, 5  ;;  %v407_v22 = vrot.slane %v405_v5, 5 }
  0x1f   : > { %1316 = vmatmul.msk.bf16.vlgmr.msra.gmra.mxu1 %vm261_vm2, %v1684_v7  ;;  %v389_v23 = vrot.slane %v388_v14, 4  ;;  %v298_v24 = vshrl.u32 %v1674_v1, 16  ;;  %v301_v25 = vshll.u32 %v1674_v1, 16  ;;  %v307_v27 = vshll.u32 %v271_v6, 16 }
  0x20   : > { %v1707_v30 = vpack.c.b16 %v1696_v17, %v1688_v12  ;;  %v402_v31 = vor.u32 %v401_v19, %v398_v18  ;;  %v312_v33 = vshrl.u32 %v1691_v15, 16  ;;  %v315_v34 = vshll.u32 %v1691_v15, 16  ;;  %876 = vmatpush.bf16.msra.mxu1 %v1467_v16 }
  0x21   : > { %v394_v35 = vsel %vm1648_vm3, %v389_v23, %v393_v0  ;;  %v300_v38 = vrot.slane %v298_v24, 4  ;;  %v303_v39 = vrot.slane %v301_v25, 5  ;;  %v309_v41 = vrot.slane %v307_v27, 5  ;;  %v1471_v0 = vld [vmem:[%s2018_s1 + $0x78] sm:$0xff] }
  0x22   : > { %1317 = vmatmul.msk.bf16.vlgmr.msra.gmra.mxu2 %vm261_vm2, %v1707_v30  ;;  %v403_v40 = vrot.slane %v402_v31, 4  ;;  %v314_v43 = vrot.slane %v312_v33, 4  ;;  %v317_v44 = vrot.slane %v315_v34, 5  ;;  %v1716_v45 = vunpack.c.l.b16 %v394_v35 }
  0x23   : > { %v304_v46 = vor.u32 %v303_v39, %v300_v38  ;;  %v321_v47 = vshll.u32 %v273_v32, 16  ;;  %v566_v48 = vrot.slane %v271_v6, 5  ;;  %936 = vmatpush.bf16.msra.mxu2 %v1469_v28  ;;  %v570_v51 = vrot.slane %v273_v32, 5  ;;  %v1470_v39 = vld [vmem:[%s2018_s1 + $0x70] sm:$0xff] }
  0x24   : > { %v408_v49 = vsel %vm1648_vm3, %v403_v40, %v407_v22  ;;  %v318_v50 = vor.u32 %v317_v44, %v314_v43  ;;  %v1331_v59 = vrot.slane %v1674_v1, 9  ;;  %v488_v62 = vunpack.c.l.b16 %v1674_v1  ;;  %v1472_v40 = vld [vmem:[%s2018_s1 + $0x80] sm:$0xff] }
  0x25   : > { %v1725_v55 = vunpack.c.l.b16 %v408_v49  ;;  %v305_v56 = vrot.slane %v304_v46, 4  ;;  %v323_v57 = vrot.slane %v321_v47, 5  ;;  %v1332_v63 = vrot.slane %v1691_v15, 9 }
  0x26   : > { %v319_v60 = vrot.slane %v318_v50, 4  ;;  %v489_v4 = vunpack.c.l.b16 %v1691_v15  ;;  %v567_v5 = vsel %vm1721_vm6, %v1331_v59, %v566_v48  ;;  %v1473_v15 = vld [vmem:[%s2018_s1 + $0x88] sm:$0xff]  ;;  %v490_v24 = vunpack.c.l.b16 %v1603_v8 }
  0x27   : > { %v1735_v2 = vpack.c.b16 %v1725_v55, %v1716_v45  ;;  %v310_v3 = vsel %vm1648_vm3, %v305_v56, %v309_v41  ;;  %v1746_v11 = vsel %vm1721_vm6, %v1332_v63, %v570_v51  ;;  %v601_v16 = vunpack.c.l.b16 %v567_v5 }
  0x28   : > { %v324_v1 = vsel %vm1648_vm3, %v319_v60, %v323_v57  ;;  %v414_v6 = vunpack.c.l.b16 %v310_v3  ;;  %v602_v18 = vunpack.c.l.b16 %v1746_v11  ;;  %v496_v22 = vpack.c.b16 %v489_v4, %v488_v62  ;;  %v288_v11 = vld [vmem:[%s1594_s4 + $0x48] sm:$0xf] }
  0x29   : > { %1318 = vmatmul.msk.bf16.vlgmr.msra.gmra.mxu3 %vm261_vm2, %v1735_v2  ;;  %v415_v14 = vunpack.c.l.b16 %v324_v1  ;;  %v1333_v25 = vrot.slane %v1603_v8, 9  ;;  %v574_v27 = vrot.slane %v1606_v9, 5  ;;  %v1334_v28 = vrot.slane %v1609_v10, 9  ;;  %v1468_v9 = vld [vmem:[%s2018_s1 + $0x60] sm:$0xff] }
  0x2a   : > { %1009 = vmatpush.bf16.msra.mxu3 %v1471_v0  ;;  %v609_v23 = vpack.c.b16 %v602_v18, %v601_v16  ;;  %v578_v31 = vrot.slane %v1618_v13, 5  ;;  %v681_v32 = vpack.c.b16 %v490_v24, %v489_v4  ;;  %v491_v33 = vunpack.c.l.b16 %v1609_v10  ;;  %937 = vmatpush.bf16.msra.mxu2 %v1468_v9 }
  0x2b   : > { %v422_v19 = vpack.c.b16 %v415_v14, %v414_v6  ;;  %v1767_v34 = vsel %vm1721_vm6, %v1333_v25, %v574_v27  ;;  %v766_v8 = vpack.c.b16 %v1669_v58, %v415_v14  ;;  %v1466_v58 = vld [vmem:[%s2018_s1 + $0x50] sm:$0xff]  ;;  %v492_v43 = vunpack.c.l.b16 %v1627_v20 }
  0x2c   : > { %v1771_v35 = vsel %vm1721_vm6, %v1334_v28, %v578_v31  ;;  %v603_v13 = vunpack.c.l.b16 %v1767_v34  ;;  %v1780_v38 = vpack.c.b16 %v491_v33, %v490_v24  ;;  %877 = vmatpush.bf16.msra.mxu1 %v1466_v58  ;;  %v1335_v44 = vrot.slane %v1627_v20, 9 }
  0x2d   : > { %1315 = vmatmul.msk.bf16.vlgmr.msra.gmra.mxu0 %vm261_vm2, %v422_v19  ;;  %v604_v10 = vunpack.c.l.b16 %v1771_v35  ;;  %v582_v46 = vrot.slane %v1630_v21, 5  ;;  %v1336_v47 = vrot.slane %v1633_v26, 9  ;;  %v586_v48 = vrot.slane %v1636_v29, 5 }
  0x2e   : > { %1073 = vmatpush.bf16.msra.mxu0 %v1473_v15  ;;  %1010 = vmatpush.bf16.msra.mxu3 %v1470_v39  ;;  %v682_v49 = vpack.c.b16 %v492_v43, %v491_v33  ;;  %v493_v50 = vunpack.c.l.b16 %v1633_v26  ;;  %v767_v20 = vpack.c.b16 %v1688_v12, %v1671_v61  ;;  %v1818_v26 = vld [vmem:[%s1594_s4 + $0x40] sm:$0xf]  ;;  %v494_v60 = vunpack.c.l.b16 %v1644_v36  ;;  %v287_v15 = vld [vmem:[%s1594_s4 + $0x44] sm:$0x1] }
  0x2f   : > { %1327 = vmatmul.msk.bf16.vlgmr.msrb.gmra.mxu1 %vm261_vm2, %v496_v22  ;;  %v1796_v41 = vpack.c.b16 %v604_v10, %v603_v13  ;;  %v583_v51 = vsel %vm1721_vm6, %v1335_v44, %v582_v46  ;;  %v587_v56 = vsel %vm1721_vm6, %v1336_v47, %v586_v48  ;;  %v747_v62 = vshrl.u32 %v1818_v26, 16 }
  0x30   : > { %v605_v57 = vunpack.c.l.b16 %v583_v51  ;;  %v606_v21 = vunpack.c.l.b16 %v587_v56  ;;  %v498_v59 = vpack.c.b16 %v493_v50, %v492_v43  ;;  %v750_v63 = vshll.u32 %v1818_v26, 16 }
  0x31   : > { %v1337_v61 = vrot.slane %v1644_v36, 9  ;;  %v590_v12 = vrot.slane %v1654_v42, 5  ;;  %v1338_v0 = vrot.slane %v1660_v53, 9  ;;  %v594_v3 = vrot.slane %v1663_v54, 5 }
  0x32   : > { %1351 = vmatmul.msk.bf16.vlgmr.msrb.gmra.mxu2 %vm261_vm2, %v609_v23  ;;  %1074 = vmatpush.bf16.msra.mxu0 %v1472_v40  ;;  %v611_v29 = vpack.c.b16 %v606_v21, %v605_v57  ;;  %v683_v4 = vpack.c.b16 %v494_v60, %v493_v50  ;;  %v749_v5 = vrot.slane %v747_v62, 4  ;;  %v752_v1 = vrot.slane %v750_v63, 5 }
  0x33   : > { %v495_v6 = vunpack.c.l.b16 %v1660_v53  ;;  %v591_v14 = vsel %vm1721_vm6, %v1337_v61, %v590_v12  ;;  %v595_v16 = vsel %vm1721_vm6, %v1338_v0, %v594_v3  ;;  %v768_v36 = vpack.c.b16 %v1716_v45, %v1696_v17 }
  0x34   : > { %v607_v42 = vunpack.c.l.b16 %v591_v14  ;;  %v608_v19 = vunpack.c.l.b16 %v595_v16  ;;  %v753_v54 = vor.u32 %v752_v1, %v749_v5  ;;  %v756_v22 = vshll.u32 %v287_v15, 16 }
  0x35   : > { %v499_v23 = vpack.c.b16 %v495_v6, %v494_v60  ;;  %v680_v27 = vunpack.c.l.b16 %v1818_v26  ;;  %v843_v33 = vpack.c.b16 %v605_v57, %v604_v10  ;;  %v1387_v34 = vrot.slane %v1818_v26, 9 }
  0x36   : > { %v612_v53 = vpack.c.b16 %v608_v19, %v607_v42  ;;  %v754_v24 = vrot.slane %v753_v54, 4  ;;  %v758_v25 = vrot.slane %v756_v22, 5  ;;  %v834_v35 = vrot.slane %v287_v15, 5 }
  0x37   : > { %v684_v17 = vpack.c.b16 %v680_v27, %v495_v6  ;;  %v913_v58 = vunpack.c.l.b16 %v288_v11  ;;  %v1436_v48 = vrot.slane %v288_v11, 9 }
  0x38   : > { %v759_v28 = vsel %vm1648_vm3, %v754_v24, %v758_v25  ;;  %v835_v10 = vsel %vm1721_vm6, %v1387_v34, %v834_v35 }
  0x39   : > { %1367 = vmatmul.msk.bf16.vlgmr.msrb.gmra.mxu3 %vm261_vm2, %v681_v32  ;;  %v765_v45 = vunpack.c.l.b16 %v759_v28  ;;  %v842_v32 = vpack.c.b16 %v603_v13, %v602_v18  ;;  %v968_v18 = vshrl.u32 %v288_v11, 16  ;;  %v289_v13 = vld [vmem:[%s1594_s4 + $0x4c] sm:$0x1]  ;;  %v841_v39 = vunpack.c.l.b16 %v835_v10 }
  0x3a   : > { %v914_v46 = vpack.c.b16 %v913_v58, %v680_v27 }
  0x3b   : > { %v769_v31 = vpack.c.b16 %v765_v45, %v1725_v55  ;;  %v844_v55 = vpack.c.b16 %v607_v42, %v606_v21  ;;  %v845_v43 = vpack.c.b16 %v841_v39, %v608_v19 }
  0x3d   : > { %1383 = vmatmul.msk.bf16.vlgmr.msrb.gmra.mxu0 %vm261_vm2, %v766_v8  ;;  %v970_v8 = vrot.slane %v968_v18, 4 }
  0x3f   : > { %1328 = vmatmul.msk.bf16.gmra.mxu1 %vm261_vm2, %v1780_v38 }
  0x42   : > { %1352 = vmatmul.msk.bf16.gmra.mxu2 %vm261_vm2, %v1796_v41 }
  0x49   : > { %1368 = vmatmul.msk.bf16.gmra.mxu3 %vm261_vm2, %v682_v49  ;;  %v1043_v49 = vrot.slane %v289_v13, 5 }
  0x4d   : > { %1384 = vmatmul.msk.bf16.gmra.mxu0 %vm261_vm2, %v767_v20 }
  0x4f   : > { %1329 = vmatmul.msk.bf16.gmra.mxu1 %vm261_vm2, %v498_v59 }
  0x52   : > { %1353 = vmatmul.msk.bf16.gmra.mxu2 %vm261_vm2, %v611_v29 }
  0x59   : > { %1369 = vmatmul.msk.bf16.gmra.mxu3 %vm261_vm2, %v683_v4 }
  0x5d   : > { %1385 = vmatmul.msk.bf16.gmra.mxu0 %vm261_vm2, %v768_v36 }
  0x5f   : > { %1330 = vmatmul.msk.bf16.gmra.mxu1 %vm261_vm2, %v499_v23 }
  0x62   : > { %1354 = vmatmul.msk.bf16.gmra.mxu2 %vm261_vm2, %v612_v53 }
  0x69   : > { %1370 = vmatmul.msk.bf16.gmra.mxu3 %vm261_vm2, %v684_v17 }
  0x6d   : > { %1386 = vmatmul.msk.bf16.gmra.mxu0 %vm261_vm2, %v769_v31 }
  0x6f   : > { %1400 = vmatmul.msk.bf16.vlgmr.msra.gmra.mxu1 %vm261_vm2, %v842_v32 }
  0x72   : > { %1416 = vmatmul.msk.bf16.vlgmr.msra.gmra.mxu2 %vm261_vm2, %v1780_v38  ;;  %v977_v38 = vshll.u32 %v289_v13, 16 }
  0x79   : > { %1432 = vmatmul.msk.bf16.vlgmr.msra.gmra.mxu3 %vm261_vm2, %v1684_v7  ;;  %v971_v7 = vshll.u32 %v288_v11, 16 }
  0x7b   : > { %v973_v9 = vrot.slane %v971_v7, 5 }
  0x7d   : > { %1449 = vmatmul.msk.bf16.vlgmr.msra.gmra.mxu0 %vm261_vm2, %v1796_v41  ;;  %v979_v41 = vrot.slane %v977_v38, 5 }
  0x7f   : > { %1401 = vmatmul.msk.bf16.gmra.mxu1 %vm261_vm2, %v843_v33 }
  0x82   : > { %1417 = vmatmul.msk.bf16.gmra.mxu2 %vm261_vm2, %v498_v59 }
  0x89   : > { %1433 = vmatmul.msk.bf16.gmra.mxu3 %vm261_vm2, %v1707_v30  ;;  %v974_v30 = vor.u32 %v973_v9, %v970_v8 }
  0x8b   : > { %v975_v40 = vrot.slane %v974_v30, 4 }
  0x8d   : > { %1450 = vmatmul.msk.bf16.gmra.mxu0 %vm261_vm2, %v611_v29  ;;  %v980_v47 = vsel %vm1648_vm3, %v975_v40, %v979_v41 }
  0x8e   : > { %v986_v50 = vunpack.c.l.b16 %v980_v47 }
  0x8f   : > { %1402 = vmatmul.msk.bf16.gmra.mxu1 %vm261_vm2, %v844_v55 }
  0x90   : > { %v987_v56 = vpack.c.b16 %v986_v50, %v765_v45 }
  0x92   : > { %1418 = vmatmul.msk.bf16.gmra.mxu2 %vm261_vm2, %v499_v23 }
  0x99   : > { %1434 = vmatmul.msk.bf16.gmra.mxu3 %vm261_vm2, %v1735_v2  ;;  %v1044_v2 = vsel %vm1721_vm6, %v1436_v48, %v1043_v49 }
  0x9a   : > { %v1050_v20 = vunpack.c.l.b16 %v1044_v2 }
  0x9c   : > { %v1873_v44 = vpop.f32.mrf.mxu1  ;;  %v1051_v37 = vpack.c.b16 %v1050_v20, %v841_v39 }
  0x9d   : > { %1451 = vmatmul.msk.bf16.gmra.mxu0 %vm261_vm2, %v612_v53  ;;  %v1531_v53 = vmov 0.0  }
  0x9e   : > { %262 = vst.msk [vmem:[#allocation2] sm:$0xff] %vm261_vm2, %v1531_v53 }
  0x9f   : > { %1403 = vmatmul.msk.bf16.gmra.mxu1 %vm261_vm2, %v845_v43  ;;  %263 = vst.msk [vmem:[#allocation2 + $0x8] sm:$0xff] %vm261_vm2, %v1531_v53 }
  0xa0   : > { %264 = vst.msk [vmem:[#allocation2 + $0x10] sm:$0xff] %vm261_vm2, %v1531_v53 }
  0xa1   : > { %265 = vst.msk [vmem:[#allocation2 + $0x18] sm:$0xff] %vm261_vm2, %v1531_v53 }
  0xa2   : > { %1419 = vmatmul.msk.bf16.gmra.mxu2 %vm261_vm2, %v914_v46  ;;  %266 = vst.msk [vmem:[#allocation2 + $0x20] sm:$0xff] %vm261_vm2, %v1531_v53 }
  0xa3   : > { %267 = vst.msk [vmem:[#allocation2 + $0x28] sm:$0xff] %vm261_vm2, %v1531_v53 }
  0xa4   : > { %v1882_v51 = vpop.f32.mrf.mxu1  ;;  %268 = vst.msk [vmem:[#allocation2 + $0x30] sm:$0xff] %vm261_vm2, %v1531_v53 }
  0xa5   : > { %v1884_v57 = vpop.f32.mrf.mxu2  ;;  %269 = vst.msk [vmem:[#allocation2 + $0x38] sm:$0xff] %vm261_vm2, %v1531_v53 }
  0xa9   : > { %1435 = vmatmul.msk.bf16.gmra.mxu3 %vm261_vm2, %v987_v56  ;;  %v1104_v56 = vld [vmem:[#allocation2] sm:$0xff] }
  0xaa   : > { %v460_v21 = vpop.f32.mrf.mxu0 }
  0xac   : > { %v1887_v59 = vpop.f32.mrf.mxu3  ;;  %v533_v29 = vpop.f32.mrf.mxu1 }
  0xad   : > { %1452 = vmatmul.msk.bf16.gmra.mxu0 %vm261_vm2, %v1051_v37  ;;  %v1890_v26 = vpop.f32.mrf.mxu2  ;;  %v534_v33 = vadd.f32 %v533_v29, %v460_v21 }
  0xb2   : > { %v462_v60 = vpop.f32.mrf.mxu0 }
  0xb4   : > { %v1892_v52 = vpop.f32.mrf.mxu3  ;;  %v535_v62 = vpop.f32.mrf.mxu1 }
  0xb5   : > { %v646_v63 = vpop.f32.mrf.mxu2  ;;  %v536_v8 = vadd.f32 %v535_v62, %v462_v60 }
  0xb6   : > { %v666_v18 = vadd.f32 %v646_v63, %v534_v33 }
  0xba   : > { %v803_v61 = vpop.f32.mrf.mxu0 }
  0xbc   : > { %v718_v12 = vpop.f32.mrf.mxu3  ;;  %v538_v0 = vpop.f32.mrf.mxu1 }
  0xbd   : > { %v648_v3 = vpop.f32.mrf.mxu2  ;;  %v738_v34 = vadd.f32 %v718_v12, %v666_v18  ;;  %v539_v43 = vadd.f32 %v538_v0, %v1873_v44 }
  0xbe   : > { %v667_v10 = vadd.f32 %v648_v3, %v536_v8 }
  0xbf   : > { %v823_v30 = vadd.f32 %v803_v61, %v738_v34 }
  0xc2   : > { %v805_v4 = vpop.f32.mrf.mxu0 }
  0xc4   : > { %v720_v5 = vpop.f32.mrf.mxu3  ;;  %v540_v1 = vpop.f32.mrf.mxu1 }
  0xc5   : > { %v651_v6 = vpop.f32.mrf.mxu2  ;;  %v739_v58 = vadd.f32 %v720_v5, %v667_v10  ;;  %v541_v63 = vadd.f32 %v540_v1, %v1882_v51  ;;  %v1105_v5 = vld [vmem:[#allocation2 + $0x8] sm:$0xff] }
  0xc6   : > { %v668_v48 = vadd.f32 %v651_v6, %v539_v43  ;;  %v1947_v6 = vld [vmem:[%s2019_s2] ss:$0 sm:$0xff] }
  0xc7   : > { %v824_v50 = vadd.f32 %v805_v4, %v739_v58 }
  0xca   : > { %v1894_v14 = vpop.f32.mrf.mxu0 }
  0xcc   : > { %v723_v16 = vpop.f32.mrf.mxu3  ;;  %v1896_v15 = vpop.f32.mrf.mxu1 }
  0xcd   : > { %v653_v36 = vpop.f32.mrf.mxu2  ;;  %v740_v21 = vadd.f32 %v723_v16, %v668_v48 }
  0xce   : > { %v669_v12 = vadd.f32 %v653_v36, %v541_v63  ;;  %v544_v36 = vadd.f32 %v1896_v15, %v1884_v57  ;;  %v1106_v57 = vld [vmem:[#allocation2 + $0x10] sm:$0xff] }
  0xcf   : > { %v825_v3 = vadd.f32 %v1894_v14, %v740_v21 }
  0xd2   : > { %v1898_v42 = vpop.f32.mrf.mxu0 }
  0xd4   : > { %v1900_v19 = vpop.f32.mrf.mxu3  ;;  %v1902_v54 = vpop.f32.mrf.mxu1 }
  0xd5   : > { %v1904_v22 = vpop.f32.mrf.mxu2  ;;  %v741_v51 = vadd.f32 %v1900_v19, %v669_v12 }
  0xd6   : > { %v670_v8 = vadd.f32 %v1904_v22, %v544_v36 }
  0xda   : > { %v1906_v23 = vpop.f32.mrf.mxu0 }
  0xdc   : > { %v1909_v24 = vpop.f32.mrf.mxu3  ;;  %v1911_v25 = vpop.f32.mrf.mxu1 }
  0xdd   : > { %v1914_v27 = vpop.f32.mrf.mxu2 }
  0xe2   : > { %v1921_v28 = vpop.f32.mrf.mxu0 }
  0xe4   : > { %v1924_v17 = vpop.f32.mrf.mxu3  ;;  %v1926_v45 = vpop.f32.mrf.mxu1 }
  0xe5   : > { %v1928_v31 = vpop.f32.mrf.mxu2 }
  0xea   : > { %v1930_v32 = vpop.f32.mrf.mxu0 }
  0xec   : > { %v1932_v55 = vpop.f32.mrf.mxu3  ;;  %v879_v11 = vpop.f32.mrf.mxu1 }
  0xed   : > { %v1934_v7 = vpop.f32.mrf.mxu2  ;;  %v899_v39 = vadd.f32 %v879_v11, %v823_v30  ;;  %v826_v30 = vadd.f32 %v1898_v42, %v741_v51 }
  0xf2   : > { %v1936_v35 = vpop.f32.mrf.mxu0 }
  0xf4   : > { %v1938_v9 = vpop.f32.mrf.mxu3  ;;  %v881_v13 = vpop.f32.mrf.mxu1 }
  0xf5   : > { %v939_v38 = vpop.f32.mrf.mxu2  ;;  %v900_v37 = vadd.f32 %v881_v13, %v824_v50 }
  0xf6   : > { %v959_v40 = vadd.f32 %v939_v38, %v899_v39 }
  0xfa   : > { %v1076_v41 = vpop.f32.mrf.mxu0 }
  0xfc   : > { %v1012_v46 = vpop.f32.mrf.mxu3  ;;  %v884_v47 = vpop.f32.mrf.mxu1 }
  0xfd   : > { %v1032_v49 = vadd.f32 %v1012_v46, %v959_v40  ;;  %v941_v2 = vpop.f32.mrf.mxu2  ;;  %v901_v53 = vadd.f32 %v884_v47, %v825_v3  ;;  %v742_v40 = vadd.f32 %v1909_v24, %v670_v8  ;;  %v546_v46 = vadd.f32 %v1902_v54, %v1890_v26 }
  0xfe   : > { %v960_v60 = vadd.f32 %v941_v2, %v900_v37 }
  0xff   : > { %v1096_v20 = vadd.f32 %v1076_v41, %v1032_v49  ;;  %v671_v49 = vadd.f32 %v1914_v27, %v546_v46  ;;  %v827_v24 = vadd.f32 %v1906_v23, %v742_v40  ;;  %v549_v27 = vadd.f32 %v1911_v25, %v1887_v59 }
 0x101   : > { %v1112_v29 = vadd.f32 %v1104_v56, %v1096_v20  ;;  %v1107_v20 = vld [vmem:[#allocation2 + $0x18] sm:$0xff]  ;;  %v672_v12 = vadd.f32 %v1928_v31, %v549_v27  ;;  %v551_v31 = vadd.f32 %v1926_v45, %v1892_v52 }
 0x102   : > { %v1078_v62 = vpop.f32.mrf.mxu0 }
 0x103   : > { %1120 = vst.msk [vmem:[#allocation2] sm:$0xff] %vm261_vm2, %v1112_v29 }
 0x104   : > { %v1014_v61 = vpop.f32.mrf.mxu3  ;;  %v886_v44 = vpop.f32.mrf.mxu1 }
 0x105   : > { %v1033_v0 = vadd.f32 %v1014_v61, %v960_v60  ;;  %v944_v4 = vpop.f32.mrf.mxu2  ;;  %v902_v58 = vadd.f32 %v886_v44, %v826_v30 }
 0x106   : > { %v961_v33 = vadd.f32 %v944_v4, %v901_v53 }
 0x107   : > { %v1097_v16 = vadd.f32 %v1078_v62, %v1033_v0  ;;  %v743_v62 = vadd.f32 %v1924_v17, %v671_v49 }
 0x109   : > { %v1113_v1 = vadd.f32 %v1105_v5, %v1097_v16  ;;  %v828_v17 = vadd.f32 %v1921_v28, %v743_v62  ;;  %v1108_v5 = vld [vmem:[#allocation2 + $0x20] sm:$0xff] }
 0x10a   : > { %v1131_v11 = vld [vmem:[#allocation2] sm:$0xff]  ;;  %v1081_v18 = vpop.f32.mrf.mxu0 }
 0x10b   : > { %v1143_v14 = vadd.f32 %v1947_v6, %v1131_v11  ;;  %1121 = vst.msk [vmem:[#allocation2 + $0x8] sm:$0xff] %vm261_vm2, %v1113_v1  ;;  %v744_v1 = vadd.f32 %v1932_v55, %v672_v12 }
 0x10c   : > { %v1017_v34 = vpop.f32.mrf.mxu3  ;;  %v889_v38 = vpop.f32.mrf.mxu1 }
 0x10d   : > { %v1151_v13 = vmax.f32 %v1143_v14, 0.0  ;;  %v1034_v10 = vadd.f32 %v1017_v34, %v961_v33  ;;  %v946_v19 = vpop.f32.mrf.mxu2  ;;  %v903_v29 = vadd.f32 %v889_v38, %v827_v24  ;;  %v673_v14 = vadd.f32 %v1934_v7, %v551_v31 }
 0x10e   : > { %v962_v41 = vadd.f32 %v946_v19, %v902_v58  ;;  %v829_v8 = vadd.f32 %v1930_v32, %v744_v1 }
 0x10f   : > { %v1159_v15 = vpack.c.bf16 %v1151_v13, %v1151_v13  ;;  %v1098_v39 = vadd.f32 %v1081_v18, %v1034_v10  ;;  %v1109_v10 = vld [vmem:[#allocation2 + $0x28] sm:$0xff] }
 0x111   : > { %1168 = vst.msk [vmem:[%s1960_s11] sm:$0xf] %vm1167_vm7, %v1159_v15  ;;  %v1114_v22 = vadd.f32 %v1106_v57, %v1098_v39  ;;  %v745_v57 = vadd.f32 %v1938_v9, %v673_v14 }
 0x112   : > { %v1132_v42 = vld [vmem:[#allocation2 + $0x8] sm:$0xff]  ;;  %v1083_v43 = vpop.f32.mrf.mxu0 }
 0x113   : > { %v1144_v47 = vadd.f32 %v1947_v6, %v1132_v42  ;;  %1122 = vst.msk [vmem:[#allocation2 + $0x10] sm:$0xff] %vm261_vm2, %v1114_v22  ;;  %v1110_v42 = vld [vmem:[#allocation2 + $0x30] sm:$0xff] }
 0x114   : > { %v1019_v48 = vpop.f32.mrf.mxu3  ;;  %v891_v60 = vpop.f32.mrf.mxu1 }
 0x115   : > { %v1152_v50 = vmax.f32 %v1144_v47, 0.0  ;;  %v1035_v2 = vadd.f32 %v1019_v48, %v962_v41  ;;  %v949_v56 = vpop.f32.mrf.mxu2  ;;  %v904_v51 = vadd.f32 %v891_v60, %v828_v17  ;;  %v830_v41 = vadd.f32 %v1936_v35, %v745_v57 }
 0x116   : > { %v963_v54 = vadd.f32 %v949_v56, %v903_v29 }
 0x117   : > { %v1160_v37 = vpack.c.bf16 %v1152_v50, %v1152_v50  ;;  %v1099_v21 = vadd.f32 %v1083_v43, %v1035_v2 }
 0x119   : > { %1169 = vst.msk [vmem:[%s1960_s11 + $0x4] sm:$0xf] %vm1167_vm7, %v1160_v37  ;;  %v1115_v26 = vadd.f32 %v1107_v20, %v1099_v21  ;;  %v1111_v37 = vld [vmem:[#allocation2 + $0x38] sm:$0xff] }
 0x11a   : > { %v1133_v63 = vld [vmem:[#allocation2 + $0x10] sm:$0xff]  ;;  %v1086_v61 = vpop.f32.mrf.mxu0 }
 0x11b   : > { %v1145_v23 = vadd.f32 %v1947_v6, %v1133_v63  ;;  %1123 = vst.msk [vmem:[#allocation2 + $0x18] sm:$0xff] %vm261_vm2, %v1115_v26 }
 0x11c   : > { %v1022_v44 = vpop.f32.mrf.mxu3  ;;  %v894_v33 = vpop.f32.mrf.mxu1 }
 0x11d   : > { %v1153_v0 = vmax.f32 %v1145_v23, 0.0  ;;  %v1036_v3 = vadd.f32 %v1022_v44, %v963_v54  ;;  %v951_v4 = vpop.f32.mrf.mxu2  ;;  %v905_v38 = vadd.f32 %v894_v33, %v829_v8 }
 0x11e   : > { %v964_v25 = vadd.f32 %v951_v4, %v904_v51 }
 0x11f   : > { %v1161_v16 = vpack.c.bf16 %v1153_v0, %v1153_v0  ;;  %v1100_v53 = vadd.f32 %v1086_v61, %v1036_v3 }
 0x121   : > { %1170 = vst.msk [vmem:[%s1960_s11 + $0x8] sm:$0xf] %vm1167_vm7, %v1161_v16  ;;  %v1116_v59 = vadd.f32 %v1108_v5, %v1100_v53 }
 0x122   : > { %v1134_v11 = vld [vmem:[#allocation2 + $0x18] sm:$0xff]  ;;  %v1088_v18 = vpop.f32.mrf.mxu0 }
 0x123   : > { %v1146_v28 = vadd.f32 %v1947_v6, %v1134_v11  ;;  %1124 = vst.msk [vmem:[#allocation2 + $0x20] sm:$0xff] %vm261_vm2, %v1116_v59 }
 0x124   : > { %v1024_v36 = vpop.f32.mrf.mxu3  ;;  %v896_v7 = vpop.f32.mrf.mxu1 }
 0x125   : > { %v1154_v34 = vmax.f32 %v1146_v28, 0.0  ;;  %v1037_v55 = vadd.f32 %v1024_v36, %v964_v25  ;;  %v954_v13 = vpop.f32.mrf.mxu2  ;;  %v906_v47 = vadd.f32 %v896_v7, %v830_v41 }
 0x126   : > { %v965_v45 = vadd.f32 %v954_v13, %v905_v38 }
 0x127   : > { %v1162_v30 = vpack.c.bf16 %v1154_v34, %v1154_v34  ;;  %v1101_v19 = vadd.f32 %v1088_v18, %v1037_v55 }
 0x129   : > { %1171 = vst.msk [vmem:[%s1960_s11 + $0xc] sm:$0xf] %vm1167_vm7, %v1162_v30  ;;  %v1117_v52 = vadd.f32 %v1109_v10, %v1101_v19 }
 0x12a   : > { %v1135_v15 = vld [vmem:[#allocation2 + $0x20] sm:$0xff]  ;;  %v1091_v58 = vpop.f32.mrf.mxu0 }
 0x12b   : > { %v1147_v39 = vadd.f32 %v1947_v6, %v1135_v15  ;;  %1125 = vst.msk [vmem:[#allocation2 + $0x28] sm:$0xff] %vm261_vm2, %v1117_v52 }
 0x12c   : > { %v1027_v32 = vpop.f32.mrf.mxu3 }
 0x12d   : > { %v1155_v40 = vmax.f32 %v1147_v39, 0.0  ;;  %v1038_v22 = vadd.f32 %v1027_v32, %v965_v45  ;;  %v956_v43 = vpop.f32.mrf.mxu2 }
 0x12e   : > { %v966_v49 = vadd.f32 %v956_v43, %v906_v47 }
 0x12f   : > { %v1163_v9 = vpack.c.bf16 %v1155_v40, %v1155_v40  ;;  %v1102_v46 = vadd.f32 %v1091_v58, %v1038_v22 }
 0x131   : > { %1172 = vst.msk [vmem:[%s1960_s11 + $0x10] sm:$0xf] %vm1167_vm7, %v1163_v9  ;;  %v1118_v48 = vadd.f32 %v1110_v42, %v1102_v46 }
 0x132   : > { %v1136_v50 = vld [vmem:[#allocation2 + $0x28] sm:$0xff]  ;;  %v1093_v35 = vpop.f32.mrf.mxu0 }
 0x133   : > { %v1148_v2 = vadd.f32 %v1947_v6, %v1136_v50  ;;  %1126 = vst.msk [vmem:[#allocation2 + $0x30] sm:$0xff] %vm261_vm2, %v1118_v48 }
 0x134   : > { %v1029_v24 = vpop.f32.mrf.mxu3 }
 0x135   : > { %v1156_v56 = vmax.f32 %v1148_v2, 0.0  ;;  %v1039_v20 = vadd.f32 %v1029_v24, %v966_v49 }
 0x137   : > { %v1164_v21 = vpack.c.bf16 %v1156_v56, %v1156_v56  ;;  %v1103_v29 = vadd.f32 %v1093_v35, %v1039_v20 }
 0x139   : > { %1173 = vst.msk [vmem:[%s1960_s11 + $0x14] sm:$0xf] %vm1167_vm7, %v1164_v21  ;;  %v1119_v60 = vadd.f32 %v1111_v37, %v1103_v29 }
 0x13a   : > { %v1137_v62 = vld [vmem:[#allocation2 + $0x30] sm:$0xff] }
 0x13b   : > { %v1149_v26 = vadd.f32 %v1947_v6, %v1137_v62  ;;  %1127 = vst.msk [vmem:[#allocation2 + $0x38] sm:$0xff] %vm261_vm2, %v1119_v60 }
 0x13d   : > { %v1157_v54 = vmax.f32 %v1149_v26, 0.0 }
 0x13f   : > { %v1165_v63 = vpack.c.bf16 %v1157_v54, %v1157_v54 }
 0x141   : > { %1174 = vst.msk [vmem:[%s1960_s11 + $0x18] sm:$0xf] %vm1167_vm7, %v1165_v63 }
 0x142   : > { %v1138_v61 = vld [vmem:[#allocation2 + $0x38] sm:$0xff] }
 0x143   : > { %v1150_v27 = vadd.f32 %v1947_v6, %v1138_v61 }
 0x145   : > { %v1158_v23 = vmax.f32 %v1150_v27, 0.0 }
 0x147   : > { %v1166_v44 = vpack.c.bf16 %v1158_v23, %v1158_v23 }
 0x149   : > { %1175 = vst.msk [vmem:[%s1960_s11 + $0x1c] sm:$0xf] %vm1167_vm7, %v1166_v44 }
 0x14a PF: > { %s13_s14 = sadd.s32 1, %s1529_s14   ;;  %s2025_s12 = smov %s1525_s13 }
 0x14b   : > { %p10_p5 = scmp.ge.s32.totalorder %s13_s14, 4   ;;  %s2026_s13 = smov %s2028_s15 }
 0x14d   :  { %12 = sbr.rel (!%p10_p5) target bundleno = 2 (0x2), region = 84 }

</bundles_post_ra>
